<compile_context>
chip_gen: v5e
topology: v5e:2x2
jax: 0.10.0
libtpu: 0.0.40
codegen_flags: <defaults>
</compile_context>

<pallas_src>
import functools

import jax
import jax.numpy as jnp
import numpy as np
from jax import lax
from jax.experimental import pallas as pl
from jax.experimental.pallas import tpu as pltpu

LANE = 128  # TPU lane width (last-dim vreg extent)


def _round_up(n, m):
    return ((n + m - 1) // m) * m


def _vmem_capacity_bytes():
    try:
        return int(pltpu.get_tpu_info().vmem_capacity_bytes)
    except Exception:
        return 64 * 1024 * 1024  # conservative fallback (v7x per-core VMEM)


def _workingset_bytes(th, w, cp, mp):
    """Rough per-step VMEM working set for the kernel at row-tile TH."""
    f32, bf16 = 4, 2
    x_blk = th * w * cp * f32
    out_blk = th * w * cp * f32
    halo = 2 * w * cp * f32
    weights = (3 * 3 * cp * mp + mp * cp) * bf16
    slab = (th + 2) * (w + 2) * cp * bf16
    win = th * w * 3 * cp * bf16          # one ky window live at a time
    acc = th * w * mp * f32
    hmid = th * w * mp * bf16
    y = th * w * cp * f32
    # x/out/halos/weights are double-buffered by the BlockSpec pipeline.
    return 2 * (x_blk + out_blk + halo + weights) + slab + win + acc + hmid + y


def _pick_block_rows(h, w, cp, mp, budget, target=64):
    """Largest divisor of h (<= target) whose working set fits the VMEM budget."""
    for t in range(min(h, target), 0, -1):
        if h % t == 0 and _workingset_bytes(t, w, cp, mp) <= budget:
            return t
    return 1  # 1 always divides h; budget may still be exceeded for huge W*Cp


def residual_kernel(x_ref, top_ref, bot_ref, w3_ref, w1_ref, out_ref, slab_ref):
    """One (image, row-tile) grid step.

    x_ref    : (1, TH, W, Cp) f32   input rows (un-ReLU'd, no halo)
    top_ref  : (1, 1,  W, Cp) f32   row above the tile (clamped; masked at r == 0)
    bot_ref  : (1, 1,  W, Cp) f32   row below the tile (clamped; masked at r == last)
    w3_ref   : (3, 3*Cp, Mp)  bf16  3x3 weights, layout [ky, kx*Cp + c, m]
    w1_ref   : (Mp, Cp)       bf16  1x1 weights, layout [m, c]
    out_ref  : (1, TH, W, Cp) f32
    slab_ref : (TH+2, W+2, Cp) bf16 VMEM scratch (ReLU'd, zero-bordered slab)
    """
    r = pl.program_id(1)
    num_r = pl.num_programs(1)

    _, th, w, cp = x_ref.shape
    mm_dtype = slab_ref.dtype

    x_rows = x_ref[0]                                        # (TH, W, Cp) f32

    # ---- build the ReLU'd, zero-bordered slab directly in the bf16 scratch ------
    # Conv2d padding=1 == zero halo here because ReLU(0) = 0.
    relu_x = jnp.maximum(x_rows, 0.0).astype(mm_dtype)       # (TH, W, Cp) bf16
    top = jnp.maximum(top_ref[0], 0.0).astype(mm_dtype)      # (1, W, Cp)
    bot = jnp.maximum(bot_ref[0], 0.0).astype(mm_dtype)
    top = jnp.where(r > 0, top, jnp.zeros_like(top))          # image top border
    bot = jnp.where(r < num_r - 1, bot, jnp.zeros_like(bot))  # image bottom border

    zcol = jnp.zeros((th + 2, 1, cp), mm_dtype)
    slab_ref[:, 0:1, :] = zcol                       # left  W-halo column (pad=1)
    slab_ref[:, w + 1:w + 2, :] = zcol               # right W-halo column (pad=1)
    slab_ref[0:1, 1:w + 1, :] = top                  # row above the tile
    slab_ref[th + 1:th + 2, 1:w + 1, :] = bot        # row below the tile
    slab_ref[1:th + 1, 1:w + 1, :] = relu_x          # tile interior
    # Every slab element is (re)written each step -> no cross-step state; both grid
    # axes can stay "parallel".

    # ---- 3x3 conv: one MXU matmul per ky, kx taps folded into K = 3*Cp ----------
    acc = None
    for ky in range(3):
        win = jnp.concatenate(
            [slab_ref[ky:ky + th, kx:kx + w, :] for kx in range(3)], axis=-1)
        win = win.reshape(th * w, 3 * cp)                      # bf16, built once
        part = jnp.dot(win, w3_ref[ky], preferred_element_type=jnp.float32)
        acc = part if acc is None else acc + part              # (TH*W, Mp) f32

    hmid = jnp.maximum(acc, 0.0).astype(mm_dtype)              # second ReLU -> bf16
    y = jnp.dot(hmid, w1_ref[...], preferred_element_type=jnp.float32)  # (TH*W, Cp)

    res = x_rows.reshape(th * w, cp)                           # un-ReLU'd skip path
    out_ref[...] = (res + y).reshape(1, th, w, cp).astype(out_ref.dtype)


def residual_forward_nhwc(x_nhwc, w3, w1, *, block_rows=None,
                          matmul_dtype=jnp.bfloat16):
    """Core entry point. x_nhwc: (N, H, W, C); w3: (C//2, C, 3, 3); w1: (C, C//2, 1, 1)."""
    n, h, w, c = x_nhwc.shape
    mid = w3.shape[0]
    cp = _round_up(max(c, LANE), LANE)      # lane-dense channels
    mp = _round_up(max(mid, LANE), LANE)    # lane-dense conv mid width

    # Small-C fallback: zero-pad channels to 128 (one extra HBM pass, 32x inflation
    # for C=4).  When C is already a multiple of 128 there is NO wrapper pad at all.
    x_in = x_nhwc if cp == c else jnp.pad(
        x_nhwc, ((0, 0), (0, 0), (0, 0), (0, cp - c)))

    vmem_cap = _vmem_capacity_bytes()
    if block_rows is not None:
        th = block_rows
    else:
        th = _pick_block_rows(h, w, cp, mp, budget=int(0.45 * vmem_cap))
    assert h % th == 0, f"block_rows={th} must divide H={h}"
    ht = h // th

    # Weight re-layout:  w3_k[ky, kx*Cp + c, m] = w3[m, c, ky, kx]
    w3_k = jnp.transpose(w3, (2, 3, 1, 0))                          # (3, 3, C, mid)
    w3_k = jnp.pad(w3_k, ((0, 0), (0, 0), (0, cp - c), (0, mp - mid)))
    w3_k = w3_k.reshape(3, 3 * cp, mp).astype(matmul_dtype)
    #                    w1_k[m, c] = w1[c, m]
    w1_k = jnp.transpose(w1[:, :, 0, 0], (1, 0))
    w1_k = jnp.pad(w1_k, ((0, mp - mid), (0, cp - c))).astype(matmul_dtype)

    x_spec = pl.BlockSpec((1, th, w, cp), lambda ni, ri: (ni, ri, 0, 0))
    # Halo rows: block size 1 on H, so the index_map value is the row index.
    top_spec = pl.BlockSpec(
        (1, 1, w, cp), lambda ni, ri: (ni, jnp.maximum(ri * th - 1, 0), 0, 0))
    bot_spec = pl.BlockSpec(
        (1, 1, w, cp), lambda ni, ri: (ni, jnp.minimum(ri * th + th, h - 1), 0, 0))
    # Weights are grid-invariant (same block every step -> stay resident).
    # pipeline_mode=pl.Buffered(1) would drop their second VMEM buffer; omitted
    # since the weight blocks are tiny (~330 KB bf16).
    w3_spec = pl.BlockSpec((3, 3 * cp, mp), lambda ni, ri: (0, 0, 0))
    w1_spec = pl.BlockSpec((mp, cp), lambda ni, ri: (0, 0))
    out_spec = pl.BlockSpec((1, th, w, cp), lambda ni, ri: (ni, ri, 0, 0))

    est = _workingset_bytes(th, w, cp, mp)
    vmem_limit = int(min(0.9 * vmem_cap, max(32 << 20, 2 * est)))

    out_padded = pl.pallas_call(
        residual_kernel,
        out_shape=jax.ShapeDtypeStruct((n, h, w, cp), x_nhwc.dtype),
        grid_spec=pltpu.PrefetchScalarGridSpec(
            num_scalar_prefetch=0,
            grid=(n, ht),
            in_specs=[x_spec, top_spec, bot_spec, w3_spec, w1_spec],
            out_specs=out_spec,
            scratch_shapes=[pltpu.VMEM((th + 2, w + 2, cp), matmul_dtype)],
        ),
        compiler_params=pltpu.CompilerParams(
            dimension_semantics=("parallel", "parallel"),
            vmem_limit_bytes=vmem_limit),
    )(x_in, x_in, x_in, w3_k, w1_k)

    # Skip the channel slice (an extra HBM pass) when C is already lane-dense.
    return out_padded if cp == c else out_padded[..., :c]


def residual_forward(x_nchw, w3, w1, *, block_rows=None):
    """NCHW adapter matching the PyTorch module's layout.  In a real model keep the
    tensors NHWC end-to-end and call residual_forward_nhwc directly so these two
    transpose passes disappear."""
    x_nhwc = jnp.transpose(x_nchw, (0, 2, 3, 1))
    out_nhwc = residual_forward_nhwc(x_nhwc, w3, w1, block_rows=block_rows)
    return jnp.transpose(out_nhwc, (0, 3, 1, 2))


# ----------------------------- references ---------------------------------------

def _conv(x, w, padding):
    dn = lax.conv_dimension_numbers(x.shape, w.shape, ("NCHW", "OIHW", "NCHW"))
    return lax.conv_general_dilated(x, w, (1, 1), padding, dimension_numbers=dn,
                                    precision=lax.Precision.HIGHEST)


def residual_reference(x, w3, w1):
    """Exact-f32 reference matching the PyTorch module."""
    a = jax.nn.relu(x)
    h = jax.nn.relu(_conv(a, w3, ((1, 1), (1, 1))))
    return x + _conv(h, w1, ((0, 0), (0, 0)))


def residual_reference_bf16_operands(x, w3, w1):
    """Reference reproducing the kernel's numerics: matmul operands rounded to bf16,
    products/accumulation in f32."""
    rb = lambda t: t.astype(jnp.bfloat16).astype(jnp.float32)
    a = rb(jax.nn.relu(x))
    h = rb(jax.nn.relu(_conv(a, rb(w3), ((1, 1), (1, 1)))))
    return x + _conv(h, rb(w1), ((0, 0), (0, 0)))


if __name__ == "__main__":
    key = jax.random.PRNGKey(0)
    k_x, k_w3, k_w1 = jax.random.split(key, 3)

    N, C, H, W = 2, 4, 16, 16
    mid = C // 2

    x = jax.random.normal(k_x, (N, C, H, W), dtype=jnp.float32)
    w3 = jax.random.normal(k_w3, (mid, C, 3, 3), dtype=jnp.float32) / np.sqrt(C * 9)
    w1 = jax.random.normal(k_w1, (C, mid, 1, 1), dtype=jnp.float32) / np.sqrt(mid)

    ref_bf16 = jax.block_until_ready(residual_reference_bf16_operands(x, w3, w1))
    ref_f32 = jax.block_until_ready(residual_reference(x, w3, w1))

    # Multi-tile grid (2 row tiles per image): exercises halo fetch + border masking.
    out = jax.block_until_ready(
        jax.jit(functools.partial(residual_forward, block_rows=8))(x, w3, w1))
    np.testing.assert_allclose(np.asarray(out), np.asarray(ref_bf16),
                               rtol=3e-2, atol=3e-2)
    np.testing.assert_allclose(np.asarray(out), np.asarray(ref_f32),
                               rtol=1e-1, atol=1e-1)

    # Auto-picked (VMEM-aware) row tile: single tile per image here, so both halos
    # are masked in the same step.
    out_auto = jax.block_until_ready(jax.jit(residual_forward)(x, w3, w1))
    np.testing.assert_allclose(np.asarray(out_auto), np.asarray(ref_bf16),
                               rtol=3e-2, atol=3e-2)

    print("KERNEL_OK")
</pallas_src>

<mosaic_0001>
module attributes {stable_mosaic.version = 11 : i64} {
  func.func @residual_kernel(%arg0: i32, %arg1: i32, %arg2: memref<1x8x16x128xf32, #tpu.memory_space<vmem>>, %arg3: memref<1x1x16x128xf32, #tpu.memory_space<vmem>>, %arg4: memref<1x1x16x128xf32, #tpu.memory_space<vmem>>, %arg5: memref<3x384x128xbf16, #tpu.memory_space<vmem>>, %arg6: memref<128x128xbf16, #tpu.memory_space<vmem>>, %arg7: memref<1x8x16x128xf32, #tpu.memory_space<vmem>>, %arg8: memref<10x18x128xbf16, #tpu.memory_space<vmem>>) attributes {dimension_semantics = [#tpu.dimension_semantics<parallel>, #tpu.dimension_semantics<parallel>], iteration_bounds = array<i64: 2, 2>, scalar_prefetch = 0 : i64, scratch_operands = 1 : i64, tpu.core_type = #tpu.core_type<tc>, window_params = [{transform_indices = @transform_0, window_bounds = array<i64: 1, 8, 16, 128>}, {transform_indices = @transform_1, window_bounds = array<i64: 1, 1, 16, 128>}, {transform_indices = @transform_2, window_bounds = array<i64: 1, 1, 16, 128>}, {pipeline_mode = #tpu.pipeline_mode<synchronous>, transform_indices = @transform_3, window_bounds = array<i64: 3, 384, 128>}, {pipeline_mode = #tpu.pipeline_mode<synchronous>, transform_indices = @transform_4, window_bounds = array<i64: 128, 128>}, {transform_indices = @transform_5, window_bounds = array<i64: 1, 8, 16, 128>}]} {
    %c0 = arith.constant 0 : index
    %c0_0 = arith.constant 0 : index
    %c0_1 = arith.constant 0 : index
    %c0_2 = arith.constant 0 : index
    %0 = vector.load %arg2[%c0, %c0_0, %c0_1, %c0_2] : memref<1x8x16x128xf32, #tpu.memory_space<vmem>>, vector<1x8x16x128xf32>
    %1 = vector.shape_cast %0 : vector<1x8x16x128xf32> to vector<8x16x128xf32>
    %cst = arith.constant 0.000000e+00 : f32
    %2 = vector.broadcast %cst : f32 to vector<8x16x128xf32>
    %3 = arith.maximumf %1, %2 : vector<8x16x128xf32>
    %4 = arith.truncf %3 : vector<8x16x128xf32> to vector<8x16x128xbf16>
    %c0_3 = arith.constant 0 : index
    %c0_4 = arith.constant 0 : index
    %c0_5 = arith.constant 0 : index
    %c0_6 = arith.constant 0 : index
    %5 = vector.load %arg3[%c0_3, %c0_4, %c0_5, %c0_6] : memref<1x1x16x128xf32, #tpu.memory_space<vmem>>, vector<1x1x16x128xf32>
    %6 = vector.shape_cast %5 : vector<1x1x16x128xf32> to vector<1x16x128xf32>
    %cst_7 = arith.constant 0.000000e+00 : f32
    %7 = vector.broadcast %cst_7 : f32 to vector<1x16x128xf32>
    %8 = arith.maximumf %6, %7 : vector<1x16x128xf32>
    %9 = arith.truncf %8 : vector<1x16x128xf32> to vector<1x16x128xbf16>
    %c0_8 = arith.constant 0 : index
    %c0_9 = arith.constant 0 : index
    %c0_10 = arith.constant 0 : index
    %c0_11 = arith.constant 0 : index
    %10 = vector.load %arg4[%c0_8, %c0_9, %c0_10, %c0_11] : memref<1x1x16x128xf32, #tpu.memory_space<vmem>>, vector<1x1x16x128xf32>
    %11 = vector.shape_cast %10 : vector<1x1x16x128xf32> to vector<1x16x128xf32>
    %cst_12 = arith.constant 0.000000e+00 : f32
    %12 = vector.broadcast %cst_12 : f32 to vector<1x16x128xf32>
    %13 = arith.maximumf %11, %12 : vector<1x16x128xf32>
    %14 = arith.truncf %13 : vector<1x16x128xf32> to vector<1x16x128xbf16>
    %c0_i32 = arith.constant 0 : i32
    %15 = arith.cmpi sgt, %arg1, %c0_i32 : i32
    %cst_13 = arith.constant 0.000000e+00 : bf16
    %16 = vector.broadcast %cst_13 : bf16 to vector<1x16x128xbf16>
    %17 = arith.select %15, %9, %16 : vector<1x16x128xbf16>
    %c1_i32 = arith.constant 1 : i32
    %18 = arith.cmpi slt, %arg1, %c1_i32 : i32
    %cst_14 = arith.constant 0.000000e+00 : bf16
    %19 = vector.broadcast %cst_14 : bf16 to vector<1x16x128xbf16>
    %20 = arith.select %18, %14, %19 : vector<1x16x128xbf16>
    %cst_15 = arith.constant 0.000000e+00 : bf16
    %21 = vector.broadcast %cst_15 : bf16 to vector<10x1x128xbf16>
    %c0_16 = arith.constant 0 : index
    %c0_17 = arith.constant 0 : index
    %c0_18 = arith.constant 0 : index
    %22 = vector.load %arg8[%c0_16, %c0_17, %c0_18] : memref<10x18x128xbf16, #tpu.memory_space<vmem>>, vector<10x1x128xbf16>
    tpu.vector_store %arg8[%c0_16, %c0_17, %c0_18], %21 {strides = array<i32>} : memref<10x18x128xbf16, #tpu.memory_space<vmem>>, vector<10x1x128xbf16>,
    %c0_19 = arith.constant 0 : index
    %c17 = arith.constant 17 : index
    %c0_20 = arith.constant 0 : index
    %23 = vector.load %arg8[%c0_19, %c17, %c0_20] : memref<10x18x128xbf16, #tpu.memory_space<vmem>>, vector<10x1x128xbf16>
    tpu.vector_store %arg8[%c0_19, %c17, %c0_20], %21 {strides = array<i32>} : memref<10x18x128xbf16, #tpu.memory_space<vmem>>, vector<10x1x128xbf16>,
    %c0_21 = arith.constant 0 : index
    %c1 = arith.constant 1 : index
    %c0_22 = arith.constant 0 : index
    %24 = vector.load %arg8[%c0_21, %c1, %c0_22] : memref<10x18x128xbf16, #tpu.memory_space<vmem>>, vector<1x16x128xbf16>
    tpu.vector_store %arg8[%c0_21, %c1, %c0_22], %17 {strides = array<i32>} : memref<10x18x128xbf16, #tpu.memory_space<vmem>>, vector<1x16x128xbf16>,
    %c9 = arith.constant 9 : index
    %c1_23 = arith.constant 1 : index
    %c0_24 = arith.constant 0 : index
    %25 = vector.load %arg8[%c9, %c1_23, %c0_24] : memref<10x18x128xbf16, #tpu.memory_space<vmem>>, vector<1x16x128xbf16>
    tpu.vector_store %arg8[%c9, %c1_23, %c0_24], %20 {strides = array<i32>} : memref<10x18x128xbf16, #tpu.memory_space<vmem>>, vector<1x16x128xbf16>,
    %c1_25 = arith.constant 1 : index
    %c1_26 = arith.constant 1 : index
    %c0_27 = arith.constant 0 : index
    %26 = vector.load %arg8[%c1_25, %c1_26, %c0_27] : memref<10x18x128xbf16, #tpu.memory_space<vmem>>, vector<8x16x128xbf16>
    tpu.vector_store %arg8[%c1_25, %c1_26, %c0_27], %4 {strides = array<i32>} : memref<10x18x128xbf16, #tpu.memory_space<vmem>>, vector<8x16x128xbf16>,
    %c0_28 = arith.constant 0 : index
    %c0_29 = arith.constant 0 : index
    %c0_30 = arith.constant 0 : index
    %27 = vector.load %arg8[%c0_28, %c0_29, %c0_30] : memref<10x18x128xbf16, #tpu.memory_space<vmem>>, vector<8x16x128xbf16>
    %c0_31 = arith.constant 0 : index
    %c1_32 = arith.constant 1 : index
    %c0_33 = arith.constant 0 : index
    %28 = vector.load %arg8[%c0_31, %c1_32, %c0_33] : memref<10x18x128xbf16, #tpu.memory_space<vmem>>, vector<8x16x128xbf16>
    %c0_34 = arith.constant 0 : index
    %c2 = arith.constant 2 : index
    %c0_35 = arith.constant 0 : index
    %29 = vector.load %arg8[%c0_34, %c2, %c0_35] : memref<10x18x128xbf16, #tpu.memory_space<vmem>>, vector<8x16x128xbf16>
    %30 = tpu.concatenate %27, %28, %29 in 2 : vector<8x16x128xbf16>, vector<8x16x128xbf16>, vector<8x16x128xbf16> -> vector<8x16x384xbf16>
    %31 = vector.shape_cast %30 : vector<8x16x384xbf16> to vector<128x384xbf16>
    %c0_36 = arith.constant 0 : index
    %c0_37 = arith.constant 0 : index
    %c0_38 = arith.constant 0 : index
    %32 = vector.load %arg5[%c0_36, %c0_37, %c0_38] : memref<3x384x128xbf16, #tpu.memory_space<vmem>>, vector<1x384x128xbf16>
    %33 = vector.shape_cast %32 : vector<1x384x128xbf16> to vector<384x128xbf16>
    %cst_39 = arith.constant dense<0.000000e+00> : vector<128x128xf32>
    %34 = tpu.matmul %31, %33, %cst_39 {dimension_numbers = #tpu.dot_dimension_numbers<[1], [0], [0], [1], [0, 0, 1, 1], [], []>} : vector<128x384xbf16>, vector<384x128xbf16>, vector<128x128xf32> -> vector<128x128xf32>
    %c1_40 = arith.constant 1 : index
    %c0_41 = arith.constant 0 : index
    %c0_42 = arith.constant 0 : index
    %35 = vector.load %arg8[%c1_40, %c0_41, %c0_42] : memref<10x18x128xbf16, #tpu.memory_space<vmem>>, vector<8x16x128xbf16>
    %c1_43 = arith.constant 1 : index
    %c1_44 = arith.constant 1 : index
    %c0_45 = arith.constant 0 : index
    %36 = vector.load %arg8[%c1_43, %c1_44, %c0_45] : memref<10x18x128xbf16, #tpu.memory_space<vmem>>, vector<8x16x128xbf16>
    %c1_46 = arith.constant 1 : index
    %c2_47 = arith.constant 2 : index
    %c0_48 = arith.constant 0 : index
    %37 = vector.load %arg8[%c1_46, %c2_47, %c0_48] : memref<10x18x128xbf16, #tpu.memory_space<vmem>>, vector<8x16x128xbf16>
    %38 = tpu.concatenate %35, %36, %37 in 2 : vector<8x16x128xbf16>, vector<8x16x128xbf16>, vector<8x16x128xbf16> -> vector<8x16x384xbf16>
    %39 = vector.shape_cast %38 : vector<8x16x384xbf16> to vector<128x384xbf16>
    %c1_49 = arith.constant 1 : index
    %c0_50 = arith.constant 0 : index
    %c0_51 = arith.constant 0 : index
    %40 = vector.load %arg5[%c1_49, %c0_50, %c0_51] : memref<3x384x128xbf16, #tpu.memory_space<vmem>>, vector<1x384x128xbf16>
    %41 = vector.shape_cast %40 : vector<1x384x128xbf16> to vector<384x128xbf16>
    %cst_52 = arith.constant dense<0.000000e+00> : vector<128x128xf32>
    %42 = tpu.matmul %39, %41, %cst_52 {dimension_numbers = #tpu.dot_dimension_numbers<[1], [0], [0], [1], [0, 0, 1, 1], [], []>} : vector<128x384xbf16>, vector<384x128xbf16>, vector<128x128xf32> -> vector<128x128xf32>
    %43 = arith.addf %34, %42 : vector<128x128xf32>
    %c2_53 = arith.constant 2 : index
    %c0_54 = arith.constant 0 : index
    %c0_55 = arith.constant 0 : index
    %44 = vector.load %arg8[%c2_53, %c0_54, %c0_55] : memref<10x18x128xbf16, #tpu.memory_space<vmem>>, vector<8x16x128xbf16>
    %c2_56 = arith.constant 2 : index
    %c1_57 = arith.constant 1 : index
    %c0_58 = arith.constant 0 : index
    %45 = vector.load %arg8[%c2_56, %c1_57, %c0_58] : memref<10x18x128xbf16, #tpu.memory_space<vmem>>, vector<8x16x128xbf16>
    %c2_59 = arith.constant 2 : index
    %c2_60 = arith.constant 2 : index
    %c0_61 = arith.constant 0 : index
    %46 = vector.load %arg8[%c2_59, %c2_60, %c0_61] : memref<10x18x128xbf16, #tpu.memory_space<vmem>>, vector<8x16x128xbf16>
    %47 = tpu.concatenate %44, %45, %46 in 2 : vector<8x16x128xbf16>, vector<8x16x128xbf16>, vector<8x16x128xbf16> -> vector<8x16x384xbf16>
    %48 = vector.shape_cast %47 : vector<8x16x384xbf16> to vector<128x384xbf16>
    %c2_62 = arith.constant 2 : index
    %c0_63 = arith.constant 0 : index
    %c0_64 = arith.constant 0 : index
    %49 = vector.load %arg5[%c2_62, %c0_63, %c0_64] : memref<3x384x128xbf16, #tpu.memory_space<vmem>>, vector<1x384x128xbf16>
    %50 = vector.shape_cast %49 : vector<1x384x128xbf16> to vector<384x128xbf16>
    %cst_65 = arith.constant dense<0.000000e+00> : vector<128x128xf32>
    %51 = tpu.matmul %48, %50, %cst_65 {dimension_numbers = #tpu.dot_dimension_numbers<[1], [0], [0], [1], [0, 0, 1, 1], [], []>} : vector<128x384xbf16>, vector<384x128xbf16>, vector<128x128xf32> -> vector<128x128xf32>
    %52 = arith.addf %43, %51 : vector<128x128xf32>
    %cst_66 = arith.constant 0.000000e+00 : f32
    %53 = vector.broadcast %cst_66 : f32 to vector<128x128xf32>
    %54 = arith.maximumf %52, %53 : vector<128x128xf32>
    %55 = arith.truncf %54 : vector<128x128xf32> to vector<128x128xbf16>
    %c0_67 = arith.constant 0 : index
    %c0_68 = arith.constant 0 : index
    %56 = vector.load %arg6[%c0_67, %c0_68] : memref<128x128xbf16, #tpu.memory_space<vmem>>, vector<128x128xbf16>
    %cst_69 = arith.constant dense<0.000000e+00> : vector<128x128xf32>
    %57 = tpu.matmul %55, %56, %cst_69 {dimension_numbers = #tpu.dot_dimension_numbers<[1], [0], [0], [1], [0, 0, 1, 1], [], []>} : vector<128x128xbf16>, vector<128x128xbf16>, vector<128x128xf32> -> vector<128x128xf32>
    %58 = vector.shape_cast %1 : vector<8x16x128xf32> to vector<128x128xf32>
    %59 = arith.addf %58, %57 : vector<128x128xf32>
    %60 = vector.shape_cast %59 : vector<128x128xf32> to vector<1x8x16x128xf32>
    %c0_70 = arith.constant 0 : index
    %c0_71 = arith.constant 0 : index
    %c0_72 = arith.constant 0 : index
    %c0_73 = arith.constant 0 : index
    %61 = vector.load %arg7[%c0_70, %c0_71, %c0_72, %c0_73] : memref<1x8x16x128xf32, #tpu.memory_space<vmem>>, vector<1x8x16x128xf32>
    tpu.vector_store %arg7[%c0_70, %c0_71, %c0_72, %c0_73], %60 {strides = array<i32>} : memref<1x8x16x128xf32, #tpu.memory_space<vmem>>, vector<1x8x16x128xf32>,
    return
  }
  func.func @transform_0(%arg0: i32, %arg1: i32) -> (i32, i32, i32, i32) {
    %c0_i32 = arith.constant 0 : i32
    %c0_i32_0 = arith.constant 0 : i32
    %c0_i32_1 = arith.constant 0 : i32
    return %arg0, %arg1, %c0_i32, %c0_i32_0 : i32, i32, i32, i32
  }
  func.func @transform_1(%arg0: i32, %arg1: i32) -> (i32, i32, i32, i32) {
    %c8_i32 = arith.constant 8 : i32
    %0 = arith.muli %arg1, %c8_i32 : i32
    %c1_i32 = arith.constant 1 : i32
    %1 = arith.subi %0, %c1_i32 : i32
    %c0_i32 = arith.constant 0 : i32
    %2 = arith.maxsi %1, %c0_i32 : i32
    %c0_i32_0 = arith.constant 0 : i32
    %c0_i32_1 = arith.constant 0 : i32
    %c0_i32_2 = arith.constant 0 : i32
    return %arg0, %2, %c0_i32_0, %c0_i32_1 : i32, i32, i32, i32
  }
  func.func @transform_2(%arg0: i32, %arg1: i32) -> (i32, i32, i32, i32) {
    %c8_i32 = arith.constant 8 : i32
    %0 = arith.muli %arg1, %c8_i32 : i32
    %c8_i32_0 = arith.constant 8 : i32
    %1 = arith.addi %0, %c8_i32_0 : i32
    %c15_i32 = arith.constant 15 : i32
    %2 = arith.minsi %1, %c15_i32 : i32
    %c0_i32 = arith.constant 0 : i32
    %c0_i32_1 = arith.constant 0 : i32
    %c0_i32_2 = arith.constant 0 : i32
    return %arg0, %2, %c0_i32, %c0_i32_1 : i32, i32, i32, i32
  }
  func.func @transform_3(%arg0: i32, %arg1: i32) -> (i32, i32, i32) {
    %c0_i32 = arith.constant 0 : i32
    %c0_i32_0 = arith.constant 0 : i32
    %c0_i32_1 = arith.constant 0 : i32
    %c0_i32_2 = arith.constant 0 : i32
    return %c0_i32, %c0_i32_0, %c0_i32_1 : i32, i32, i32
  }
  func.func @transform_4(%arg0: i32, %arg1: i32) -> (i32, i32) {
    %c0_i32 = arith.constant 0 : i32
    %c0_i32_0 = arith.constant 0 : i32
    %c0_i32_1 = arith.constant 0 : i32
    return %c0_i32, %c0_i32_0 : i32, i32
  }
  func.func @transform_5(%arg0: i32, %arg1: i32) -> (i32, i32, i32, i32) {
    %c0_i32 = arith.constant 0 : i32
    %c0_i32_0 = arith.constant 0 : i32
    %c0_i32_1 = arith.constant 0 : i32
    return %arg0, %arg1, %c0_i32, %c0_i32_0 : i32, i32, i32, i32
  }
}

</mosaic_0001>

<bundles_post_ra>
// kernel: residual_forward.1
= control target key start
LH: loop header
LB: loop body
LE: loop exit
PB: predicated region body
PF: predicated region fallthrough
CT: control target
= control target key end

     0   :  { %s3755_s18 = smov 0   ;;  %s3757_s19 = smov 0   ;;  %s4592_s0 = inlined_call_operand.vmem [shape: f32[2,16,16,128], index: 0, kind: input, shape index: {}, may-alias: {0,1,2}]   ;;  %s4593_s1 = inlined_call_operand.vmem [shape: f32[2,16,16,128], index: 1, kind: input, shape index: {}, may-alias: {0,1,2}]   ;;  %s4594_s2 = inlined_call_operand.vmem [shape: f32[2,16,16,128], index: 2, kind: input, shape index: {}, may-alias: {0,1,2}]   ;;  %s4595_s3 = inlined_call_operand.vmem [shape: bf16[3,384,128], index: 3, kind: input, shape index: {}]   ;;  %s4596_s4 = inlined_call_operand.vmem [shape: bf16[128,128], index: 4, kind: input, shape index: {}]   ;;  %s4597_s5 = inlined_call_operand.vmem [shape: f32[2,16,16,128], index: 5, kind: output, shape index: {}]  }
   0x1   :  { %s3759_s20 = smov 0   ;;  %s3761_s21 = smov 0  }
   0x2   :  { %s3763_s22 = smov 0  }
   0x3 LB: > { %s24_s23 = sadd.s32 1, %s3715_s20  ;;  %s27_s24 = sadd.s32 1, %s3719_s21  ;;  %s3723_s22 = sphi %s3763_s22, %s15_s22   ;;  %s3719_s21 = sphi %s3761_s21, %s4610_s21   ;;  %s3715_s20 = sphi %s3759_s20, %s4609_s20   ;;  %s3711_s19 = sphi %s3757_s19, %s4608_s19   ;;  %s3707_s18 = sphi %s3755_s18, %s4607_s18  }
   0x4   : > { %p25_p0 = scmp.ge.s32.totalorder %s24_s23, 2  ;;  %p2957_p1 = scmp.ge.s32.totalorder %s3723_s22, 1 }
   0x5   : > { %p273_p2 = scmp.lt.s32.totalorder %s3723_s22, 5 }
   0x6   : > { %s4612_s23 = smov (%p25_p0, %s24_s23), 0  ;;  %s4614_s24 = smov (!%p25_p0, %s27_s24), %s3719_s21 }
   0x7   : > { %p274_p3 = pnand %p2957_p1, %p273_p2  ;;  %p29_p4 = scmp.ge.s32.totalorder %s4614_s24, 2 }
   0x8   : > { %s3794_s29 = sshll.u32 (!%p274_p3), %s3707_s18, 3  ;;  %p338_p5 = scmp.lt.s32.totalorder (!%p274_p3), %s3711_s19, 1 }
   0x9   : > { %s4616_s24 = smov (%p29_p4, %s4614_s24), 0  ;;  %277 = sbr.rel (%p274_p3) target bundleno = 648 (0x288), region = 40 }
   0xa   : > { %p340_p6 = scmp.lt.s32.totalorder (!%p274_p3), %s3794_s29, 15  ;;  %s3987_s15 = sadd.s32 (!%p274_p3), 4294967295, %s3794_s29 }
   0xb   : > { %p350_p7 = scmp.gt.s32.totalorder (!%p274_p3), %s3987_s15, 0  ;;  %p2964_p8 = scmp.lt.s32.totalorder (!%p274_p3), %s3987_s15, 15 }
   0xc   : > { %p454_p9 = scmp.gt.s32.totalorder (!%p274_p3), %s3707_s18, 0  ;;  %s366_s12 = sadd.s32 (!%p274_p3), 8, %s3794_s29 }
   0xd   : > { %p4432_p10 = scmp.lt.s32.totalorder (!%p274_p3), %s366_s12, 15  ;;  %p460_p11 = scmp.lt.s32.totalorder (!%p274_p3), %s3707_s18, 1 }
   0xe   : > { %v3434_v0 = vld [vmem:[%s4595_s3 + $0xf8] sm:$0xff]  ;;  %v3433_v2 = vld [vmem:[%s4595_s3 + $0xf0] sm:$0xff]  ;;  %s4618_s19 = smov (!%p338_p5, %s3711_s19), 1  ;;  %vm466_vm0 = vcmask 1040384   ;;  %vm467_vm1 = vsmask.f32 256 }
   0xf   : > { %v3442_v1 = vld [vmem:[%s4595_s3 + $0x138] sm:$0xff]  ;;  %3577 = vmatpush.bf16.msra.mxu2 %v3434_v0  ;;  %1578 = vmatpush.bf16.msra.mxu0 %v3434_v0  ;;  %v3441_v3 = vld [vmem:[%s4595_s3 + $0x130] sm:$0xff]  ;;  %s341_s9 = scalar_select %p340_p6, %s3794_s29, 15  ;;  %vm499_vm2 = vsmask.f32 7938  ;;  %v3432_v4 = vld [vmem:[%s4595_s3 + $0xe8] sm:$0xff] }
  0x10   : > { %1627 = vmatpush.bf16.msra.mxu1 %v3442_v1  ;;  %3585 = vmatpush.bf16.msra.mxu3 %v3442_v1  ;;  %s3804_s10 = sshll.u32 %s4618_s19, 5  ;;  %vm3811_vm3 = vmand %vm466_vm0, %vm467_vm1  ;;  %v484_v6 = vld [vmem:[#allocation2 + $0x3c] sm:$0x1]  ;;  %v472_v9 = vld [vmem:[#allocation2 + $0xc] sm:$0x1]  ;;  %vm553_vm6 = vcmask 1043456  }
  0x11   : > { %s2959_s13 = sshll.u32 %s341_s9, 1  ;;  %v485_v7 = vsel %vm3811_vm3, 0, %v484_v6  ;;  %vm3822_vm4 = vmand %vm466_vm0, %vm499_vm2  ;;  %v504_v10 = vld [vmem:[#allocation2 + $0x14] sm:$0x1]  ;;  %v3440_v11 = vld [vmem:[%s4595_s3 + $0x128] sm:$0xff]  ;;  %v473_v12 = vsel %vm3811_vm3, 0, %v472_v9 }
  0x12   : > { %s3816_s14 = sadd.s32 %s3804_s10, %s2959_s13  ;;  %486 = vst [vmem:[#allocation2 + $0x3c] sm:$0x1] %v485_v7  ;;  %v505_v13 = vsel %vm3822_vm4, 0, %v504_v10  ;;  %v3431_v14 = vld [vmem:[%s4595_s3 + $0xe0] sm:$0xff]  ;;  %v487_v16 = vld [vmem:[#allocation2 + $0x48] sm:$0x1]  ;;  %vm3876_vm8 = vmand %vm553_vm6, %vm499_vm2 }
  0x13   : > { %3578 = vmatpush.bf16.msra.mxu2 %v3433_v2  ;;  %1579 = vmatpush.bf16.msra.mxu0 %v3433_v2  ;;  %s2961_s17 = sshll.u32 %s3816_s14, 3  ;;  %474 = vst [vmem:[#allocation2 + $0xc] sm:$0x1] %v473_v12  ;;  %v516_v15 = vld [vmem:[#allocation2 + $0x44] sm:$0x1]  ;;  %v488_v27 = vsel %vm3811_vm3, 0, %v487_v16 }
  0x14   : > { %1628 = vmatpush.bf16.msra.mxu1 %v3441_v3  ;;  %3586 = vmatpush.bf16.msra.mxu3 %v3441_v3  ;;  %s3842_s28 = scalar_lea.vmem %s4592_s0, %s2961_s17  ;;  %506 = vst [vmem:[#allocation2 + $0x14] sm:$0x1] %v505_v13  ;;  %v517_v20 = vsel %vm3822_vm4, 0, %v516_v15  ;;  %v3439_v25 = vld [vmem:[%s4595_s3 + $0x120] sm:$0xff]  ;;  %v3430_v32 = vld [vmem:[%s4595_s3 + $0xd8] sm:$0xff]  ;;  %v3429_v47 = vld [vmem:[%s4595_s3 + $0xd0] sm:$0xff] }
  0x15   : > { %v402_v17 = vld [vmem:[%s3842_s28 + $0x40] sm:$0xff]  ;;  %v403_v18 = vld [vmem:[%s3842_s28 + $0x48] sm:$0xff]  ;;  %518 = vst [vmem:[#allocation2 + $0x44] sm:$0x1] %v517_v20  ;;  %v404_v31 = vld [vmem:[%s3842_s28 + $0x50] sm:$0xff]  ;;  %s4034_s27 = scalar_select %p350_p7, %s3987_s15, 0 }
  0x16   : > { %v394_v19 = vld [vmem:[%s3842_s28] sm:$0xff]  ;;  %v418_v21 = vmax.f32 %v402_v17, 0.0  ;;  %v419_v22 = vmax.f32 %v403_v18, 0.0  ;;  %v395_v23 = vld [vmem:[%s3842_s28 + $0x8] sm:$0xff]  ;;  %489 = vst [vmem:[#allocation2 + $0x48] sm:$0x1] %v488_v27 }
  0x17   : > { %3579 = vmatpush.bf16.msra.mxu2 %v3432_v4  ;;  %1580 = vmatpush.bf16.msra.mxu0 %v3432_v4  ;;  %v410_v24 = vmax.f32 %v394_v19, 0.0  ;;  %v411_v26 = vmax.f32 %v395_v23, 0.0  ;;  %vm531_vm5 = vsmask.f32 4368  ;;  %v405_v34 = vld [vmem:[%s3842_s28 + $0x58] sm:$0xff]  ;;  %v420_v35 = vmax.f32 %v404_v31, 0.0 }
  0x18   : > { %1629 = vmatpush.bf16.msra.mxu1 %v3440_v11  ;;  %3587 = vmatpush.bf16.msra.mxu3 %v3440_v11  ;;  %v434_v28 = vpack.c.bf16 %v418_v21, %v418_v21  ;;  %v435_v29 = vpack.c.bf16 %v419_v22, %v419_v22  ;;  %v396_v40 = vld [vmem:[%s3842_s28 + $0x10] sm:$0xff]  ;;  %v397_v41 = vld [vmem:[%s3842_s28 + $0x18] sm:$0xff]  ;;  %vm3870_vm7 = vmor %vm467_vm1, %vm531_vm5  ;;  %v421_v51 = vmax.f32 %v405_v34, 0.0  ;;  %vm911_vm9 = vsmask.f32 7424  ;;  %s4620_s27 = smov (!%p2964_p8, %s4034_s27), 15 }
  0x19   : > { %v426_v30 = vpack.c.bf16 %v410_v24, %v410_v24  ;;  %v427_v33 = vpack.c.bf16 %v411_v26, %v411_v26  ;;  %v3438_v42 = vld [vmem:[%s4595_s3 + $0x118] sm:$0xff]  ;;  %v436_v52 = vpack.c.bf16 %v420_v35, %v420_v35  ;;  %v412_v57 = vmax.f32 %v396_v40, 0.0  ;;  %v3437_v1 = vld [vmem:[%s4595_s3 + $0x110] sm:$0xff]  ;;  %v3428_v13 = vld [vmem:[%s4595_s3 + $0xc8] sm:$0xff]  ;;  %s2969_s6 = sshll.u32 %s4620_s27, 1  ;;  %s4622_s12 = smov (!%p4432_p10, %s366_s12), 15 }
  0x1a   : > { %v659_v36 = vshrl.u32 %v434_v28, 16  ;;  %v662_v37 = vshll.u32 %v434_v28, 16  ;;  %v667_v38 = vshrl.u32 %v435_v29, 16  ;;  %v670_v39 = vshll.u32 %v435_v29, 16  ;;  %v779_v54 = vld [vmem:[#allocation2 + $0x3c] sm:$0xf]  ;;  %s4114_s27 = sadd.s32 %s2969_s6, %s3804_s10 }
  0x1b   : > { %3580 = vmatpush.bf16.msra.mxu2 %v3431_v14  ;;  %1581 = vmatpush.bf16.msra.mxu0 %v3431_v14  ;;  %v591_v43 = vshrl.u32 %v426_v30, 16  ;;  %v594_v44 = vshll.u32 %v426_v30, 16  ;;  %v599_v45 = vshrl.u32 %v427_v33, 16  ;;  %v602_v46 = vshll.u32 %v427_v33, 16  ;;  %v751_v63 = vld [vmem:[#allocation2 + $0xc] sm:$0xf] }
  0x1c   : > { %1630 = vmatpush.bf16.msra.mxu1 %v3439_v25  ;;  %3588 = vmatpush.bf16.msra.mxu3 %v3439_v25  ;;  %v661_v49 = vrot.slane %v659_v36, 7  ;;  %v669_v50 = vrot.slane %v667_v38, 7  ;;  %v413_v58 = vmax.f32 %v397_v41, 0.0  ;;  %v755_v0 = vld [vmem:[#allocation2 + $0x14] sm:$0x1]  ;;  %v437_v11 = vpack.c.bf16 %v421_v51, %v421_v51  ;;  %v3436_v19 = vld [vmem:[%s4595_s3 + $0x108] sm:$0xff] }
  0x1d   : > { %v593_v55 = vrot.slane %v591_v43, 7  ;;  %v601_v56 = vrot.slane %v599_v45, 7  ;;  %v783_v10 = vld [vmem:[#allocation2 + $0x44] sm:$0x1]  ;;  %v475_v12 = vld [vmem:[#allocation2 + $0x18] sm:$0x1]  ;;  %v428_v24 = vpack.c.bf16 %v412_v57, %v412_v57 }
  0x1e   : > { %v664_v59 = vor.u32 %v662_v37, %v661_v49  ;;  %v665_v60 = vrot.slane %v661_v49, 4  ;;  %v672_v61 = vor.u32 %v670_v39, %v669_v50  ;;  %v674_v62 = vrot.slane %v669_v50, 4  ;;  %v3896_v18 = vld [vmem:[#allocation2 + $0x20] sm:$0x1]  ;;  %v786_v23 = vld [vmem:[#allocation2 + $0x48] sm:$0xf] }
  0x1f   : > { %3581 = vmatpush.bf16.msra.mxu2 %v3430_v32  ;;  %1582 = vmatpush.bf16.msra.mxu0 %v3430_v32  ;;  %v596_v2 = vor.u32 %v594_v44, %v593_v55  ;;  %v597_v3 = vrot.slane %v593_v55, 4  ;;  %v604_v4 = vor.u32 %v602_v46, %v601_v56  ;;  %v606_v6 = vrot.slane %v601_v56, 4  ;;  %v519_v28 = vld [vmem:[#allocation2 + $0x50] sm:$0x1]  ;;  %v406_v29 = vld [vmem:[%s3842_s28 + $0x60] sm:$0xff]  ;;  %v3450_v41 = vld [vmem:[%s4595_s3 + $0x178] sm:$0xff] }
  0x20   : > { %1631 = vmatpush.bf16.msra.mxu1 %v3438_v42  ;;  %3589 = vmatpush.bf16.msra.mxu3 %v3438_v42  ;;  %v673_v7 = vsel %vm3870_vm7, %v665_v60, %v672_v61  ;;  %v780_v9 = vsel %vm3876_vm8, %v664_v59, %v779_v54  ;;  %v676_v17 = vshrl.u32 %v436_v52, 16  ;;  %v679_v20 = vshll.u32 %v436_v52, 16  ;;  %v3427_v30 = vld [vmem:[%s4595_s3 + $0xc0] sm:$0xff]  ;;  %v3911_v35 = vld [vmem:[#allocation2 + $0x54] sm:$0x1]  ;;  %v407_v45 = vld [vmem:[%s3842_s28 + $0x68] sm:$0xff] }
  0x21   : > { %781 = vst [vmem:[#allocation2 + $0x3c] sm:$0xf] %v780_v9  ;;  %v605_v14 = vsel %vm3870_vm7, %v597_v3, %v604_v4  ;;  %v752_v15 = vsel %vm3876_vm8, %v596_v2, %v751_v63  ;;  %v756_v16 = vsel %vm3811_vm3, %v606_v6, %v755_v0  ;;  %v684_v21 = vshrl.u32 %v437_v11, 16  ;;  %v3435_v36 = vld [vmem:[%s4595_s3 + $0x100] sm:$0xff]  ;;  %v3418_v54 = vld [vmem:[%s4595_s3 + $0x78] sm:$0xff]  ;;  %v3941_v60 = vld [vmem:[%s3842_s28 + $0x28] sm:$0xff] }
  0x22   : > { %782 = vst [vmem:[#allocation2 + $0x40] sm:$0xf] %v673_v7  ;;  %v687_v22 = vshll.u32 %v437_v11, 16  ;;  %v784_v25 = vsel %vm3811_vm3, %v674_v62, %v783_v10  ;;  %v678_v26 = vrot.slane %v676_v17, 7  ;;  %v429_v27 = vpack.c.bf16 %v413_v58, %v413_v58  ;;  %v398_v59 = vld [vmem:[%s3842_s28 + $0x20] sm:$0xff]  ;;  %v3449_v3 = vld [vmem:[%s4595_s3 + $0x170] sm:$0xff] }
  0x23   : > { %3582 = vmatpush.bf16.msra.mxu2 %v3429_v47  ;;  %1583 = vmatpush.bf16.msra.mxu0 %v3429_v47  ;;  %753 = vst [vmem:[#allocation2 + $0xc] sm:$0xf] %v752_v15  ;;  %v3907_v31 = vrot.slane %v684_v21, 7  ;;  %v476_v32 = vsel %vm3811_vm3, 0, %v475_v12  ;;  %v608_v33 = vshrl.u32 %v428_v24, 16  ;;  %v611_v34 = vshll.u32 %v428_v24, 16 }
  0x24   : > { %1632 = vmatpush.bf16.msra.mxu1 %v3437_v1  ;;  %3590 = vmatpush.bf16.msra.mxu3 %v3437_v1  ;;  %754 = vst [vmem:[#allocation2 + $0x10] sm:$0xf] %v605_v14  ;;  %v681_v37 = vor.u32 %v679_v20, %v678_v26  ;;  %v682_v38 = vrot.slane %v678_v26, 4  ;;  %v616_v39 = vshrl.u32 %v429_v27, 16  ;;  %v619_v40 = vshll.u32 %v429_v27, 16  ;;  %v3410_v47 = vld [vmem:[%s4595_s3 + $0x38] sm:$0xff] }
  0x25   : > { %757 = vst [vmem:[#allocation2 + $0x14] sm:$0x1] %v756_v16  ;;  %v689_v42 = vor.u32 %v687_v22, %v3907_v31  ;;  %v610_v43 = vrot.slane %v608_v33, 7  ;;  %v508_v44 = vsel %vm3822_vm4, 0, %v3896_v18  ;;  %v422_v46 = vmax.f32 %v406_v29, 0.0  ;;  %v3409_v10 = vld [vmem:[%s4595_s3 + $0x30] sm:$0xff] }
  0x26   : > { %785 = vst [vmem:[#allocation2 + $0x44] sm:$0x1] %v784_v25  ;;  %v691_v49 = vrot.slane %v3907_v31, 4  ;;  %v787_v50 = vsel %vm3876_vm8, %v681_v37, %v786_v23  ;;  %v3930_v51 = vrot.slane %v616_v39, 7  ;;  %v520_v52 = vsel %vm3822_vm4, 0, %v519_v28  ;;  %v3417_v16 = vld [vmem:[%s4595_s3 + $0x70] sm:$0xff] }
  0x27   : > { %3583 = vmatpush.bf16.msra.mxu2 %v3428_v13  ;;  %1584 = vmatpush.bf16.msra.mxu0 %v3428_v13  ;;  %477 = vst [vmem:[#allocation2 + $0x18] sm:$0x1] %v476_v32  ;;  %v690_v55 = vsel %vm3870_vm7, %v682_v38, %v689_v42  ;;  %v613_v56 = vor.u32 %v611_v34, %v610_v43  ;;  %v614_v57 = vrot.slane %v610_v43, 4  ;;  %v423_v1 = vmax.f32 %v407_v45, 0.0  ;;  %v3448_v28 = vld [vmem:[%s4595_s3 + $0x168] sm:$0xff]  ;;  %v3407_v31 = vld [vmem:[%s4595_s3 + $0x20] sm:$0xff] }
  0x28   : > { %1633 = vmatpush.bf16.msra.mxu1 %v3436_v19  ;;  %3591 = vmatpush.bf16.msra.mxu3 %v3436_v19  ;;  %788 = vst [vmem:[#allocation2 + $0x48] sm:$0xf] %v787_v50  ;;  %v438_v58 = vpack.c.bf16 %v422_v46, %v422_v46  ;;  %v621_v63 = vor.u32 %v619_v40, %v3930_v51  ;;  %v623_v0 = vrot.slane %v3930_v51, 4  ;;  %v491_v2 = vsel %vm3811_vm3, 0, %v3911_v35  ;;  %v3408_v29 = vld [vmem:[%s4595_s3 + $0x28] sm:$0xff]  ;;  %s2971_s9 = sshll.u32 %s4114_s27, 3 }
  0x29   : > { %v3943_v61 = vld [vmem:[#allocation2 + $0x3c] sm:$0xff]   ;;  %789 = vst [vmem:[#allocation2 + $0x4c] sm:$0xf] %v690_v55  ;;  %v439_v12 = vpack.c.bf16 %v423_v1, %v423_v1  ;;  %v414_v13 = vmax.f32 %v398_v59, 0.0  ;;  %v415_v14 = vmax.f32 %v3941_v60, 0.0  ;;  %s4154_s27 = scalar_lea.vmem %s4593_s1, %s2971_s9  ;;  %vm1040_vm11 = vcmask 1046528  }
  0x2a   : > { %v3945_v62 = vld [vmem:[#allocation2 + $0x3c] sm:$0xf0]  ;;  %509 = vst [vmem:[#allocation2 + $0x20] sm:$0x1] %v508_v44  ;;  %v693_v4 = vshrl.u32 %v438_v58, 16  ;;  %v696_v6 = vshll.u32 %v438_v58, 16  ;;  %v622_v11 = vsel %vm3870_vm7, %v614_v57, %v621_v63 }
  0x2b   : > { %3584 = vmatpush.bf16.msra.mxu2 %v3427_v30  ;;  %1585 = vmatpush.bf16.msra.mxu0 %v3427_v30  ;;  %v3955_v7 = vld [vmem:[#allocation2 + $0xc] sm:$0xff]   ;;  %521 = vst [vmem:[#allocation2 + $0x50] sm:$0x1] %v520_v52  ;;  %v701_v20 = vshrl.u32 %v439_v12, 16  ;;  %v704_v21 = vshll.u32 %v439_v12, 16  ;;  %v1274_v23 = vshrl.u32 %v3943_v61, 16  ;;  %v3984_v33 = vpack.c.bf16 %v414_v13, %v414_v13 }
  0x2c   : > { %1634 = vmatpush.bf16.msra.mxu1 %v3435_v36  ;;  %3592 = vmatpush.bf16.msra.mxu3 %v3435_v36  ;;  %v3957_v9 = vld [vmem:[#allocation2 + $0xc] sm:$0xf0]  ;;  %v1137_v15 = vld [vmem:[#allocation2 + $0x14] sm:$0x1]  ;;  %761 = vst [vmem:[#allocation2 + $0x1c] sm:$0xf] %v622_v11 }
  0x2d   : > { %v695_v17 = vrot.slane %v693_v4, 7  ;;  %v1209_v18 = vunpack.c.l.b16 %v1137_v15  ;;  %v1141_v19 = vld [vmem:[#allocation2 + $0x44] sm:$0x1]  ;;  %492 = vst [vmem:[#allocation2 + $0x54] sm:$0x1] %v491_v2  ;;  %v1276_v24 = vshll.u32 %v3943_v61, 16 }
  0x2e   : > { %1606 = vmatmul.bf16.vlgmr.msra.gmra.mxu2 %v3943_v61  ;;  %v1213_v22 = vunpack.c.l.b16 %v1141_v19  ;;  %v758_v25 = vld [vmem:[#allocation2 + $0x18] sm:$0xf]  ;;  %v3416_v30 = vld [vmem:[%s4595_s3 + $0x68] sm:$0xff]  ;;  %1586 = vmatmul.bf16.vlgmr.msra.gmra.mxu0 %v3955_v7  ;;  %v1226_v34 = vshrl.u32 %v3955_v7, 16  ;;  %v1228_v35 = vshll.u32 %v3955_v7, 16  ;;  %v3998_v44 = vrot.slane %v701_v20, 7 }
  0x2f   : > { %1676 = vmatpush.bf16.msrb.mxu2 %v3450_v41  ;;  %1918 = vmatpush.bf16.msrb.mxu0 %v3418_v54  ;;  %v3971_v26 = vpack.c.b16 %v1209_v18, %v1209_v18  ;;  %v759_v27 = vsel %vm3876_vm8, %v613_v56, %v758_v25  ;;  %v698_v32 = vor.u32 %v696_v6, %v695_v17  ;;  %v1278_v37 = vrot.slane %v1276_v24, 1  ;;  %v478_v39 = vld [vmem:[#allocation2 + $0x24] sm:$0x1]  ;;  %v510_v58 = vld [vmem:[#allocation2 + $0x2c] sm:$0x1]  ;;  %v408_v12 = vld [vmem:[%s3842_s28 + $0x70] sm:$0xff] }
  0x30   : > { %1869 = vmatpush.bf16.msrb.mxu3 %v3410_v47  ;;  %v3992_v36 = vpack.c.b16 %v1213_v22, %v1213_v22  ;;  %v3994_v38 = vld [vmem:[#allocation2 + $0x48] sm:$0xff]   ;;  %760 = vst [vmem:[#allocation2 + $0x18] sm:$0xf] %v759_v27  ;;  %v699_v43 = vrot.slane %v695_v17, 4  ;;  %v1230_v45 = vrot.slane %v1228_v35, 1  ;;  %v3447_v54 = vld [vmem:[%s4595_s3 + $0x160] sm:$0xff]  ;;  %v706_v51 = vor.u32 %v704_v21, %v3998_v44 }
  0x31   : > { %v1233_v40 = vshll.u32 %v3971_v26, 16  ;;  %v1288_v41 = vshll.u32 %v3994_v38, 16  ;;  %v762_v42 = vld [vmem:[#allocation2 + $0x20] sm:$0x1]  ;;  %v1279_v46 = vor.u32 %v1278_v37, %v1274_v23  ;;  %v1286_v56 = vshrl.u32 %v3994_v38, 16  ;;  %v409_v17 = vld [vmem:[%s3842_s28 + $0x78] sm:$0xff] }
  0x32   : > { %v1281_v47 = vshll.u32 %v3992_v36, 16  ;;  %v763_v50 = vsel %vm3811_vm3, %v623_v0, %v762_v42  ;;  %v790_v52 = vld [vmem:[#allocation2 + $0x50] sm:$0x1]  ;;  %v1231_v59 = vor.u32 %v1230_v45, %v1226_v34  ;;  %v431_v0 = vpack.c.bf16 %v415_v14, %v415_v14  ;;  %v522_v4 = vld [vmem:[#allocation2 + $0x5c] sm:$0x1]  ;;  %v3415_v27 = vld [vmem:[%s4595_s3 + $0x60] sm:$0xff] }
  0x33   : > { %1677 = vmatpush.bf16.msrb.mxu2 %v3449_v3  ;;  %1919 = vmatpush.bf16.msrb.mxu0 %v3417_v16  ;;  %v1235_v55 = vrot.slane %v1233_v40, 1  ;;  %764 = vst [vmem:[#allocation2 + $0x20] sm:$0x1] %v763_v50  ;;  %v791_v57 = vsel %vm3811_vm3, %v691_v49, %v790_v52  ;;  %v1290_v61 = vrot.slane %v1288_v41, 1  ;;  %v707_v49 = vsel %vm3870_vm7, %v699_v43, %v706_v51  ;;  %v493_v18 = vld [vmem:[#allocation2 + $0x60] sm:$0x1] }
  0x34   : > { %1870 = vmatpush.bf16.msrb.mxu3 %v3409_v10  ;;  %v1283_v60 = vrot.slane %v1281_v47, 1  ;;  %792 = vst [vmem:[#allocation2 + $0x50] sm:$0x1] %v791_v57  ;;  %v793_v63 = vld [vmem:[#allocation2 + $0x54] sm:$0xf]  ;;  %v708_v1 = vrot.slane %v3998_v44, 4 }
  0x35   : > { %v794_v2 = vsel %vm3876_vm8, %v698_v32, %v793_v63  ;;  %v479_v3 = vsel %vm3811_vm3, 0, %v478_v39  ;;  %v1236_v6 = vsel %vm911_vm9, %v1231_v59, %v1235_v55  ;;  %v625_v10 = vshrl.u32 %v3984_v33, 16  ;;  %796 = vst [vmem:[#allocation2 + $0x58] sm:$0xf] %v707_v49  ;;  %v3446_v24 = vld [vmem:[%s4595_s3 + $0x158] sm:$0xff]  ;;  %v4057_v40 = vld [vmem:[%s3842_s28 + $0x30] sm:$0xff] }
  0x36   : > { %v1284_v7 = vsel %vm911_vm9, %v1279_v46, %v1283_v60  ;;  %795 = vst [vmem:[#allocation2 + $0x54] sm:$0xf] %v794_v2  ;;  %v628_v11 = vshll.u32 %v3984_v33, 16  ;;  %1635 = vmatmul.bf16.vlgmr.msra.gmra.mxu1 %v1236_v6  ;;  %v633_v14 = vshrl.u32 %v431_v0, 16  ;;  %v636_v15 = vshll.u32 %v431_v0, 16  ;;  %v3406_v25 = vld [vmem:[%s4595_s3 + $0x18] sm:$0xff] }
  0x37   : > { %1678 = vmatpush.bf16.msrb.mxu2 %v3448_v28  ;;  %1920 = vmatpush.bf16.msrb.mxu0 %v3416_v30  ;;  %v4036_v13 = vld [vmem:[#allocation2 + $0x18] sm:$0xff]   ;;  %v511_v16 = vsel %vm3822_vm4, 0, %v510_v58  ;;  %480 = vst [vmem:[#allocation2 + $0x24] sm:$0x1] %v479_v3  ;;  %v627_v21 = vrot.slane %v625_v10, 7  ;;  %v523_v22 = vsel %vm3822_vm4, 0, %v522_v4  ;;  %v4054_v30 = vor.u32 %v1290_v61, %v1286_v56 }
  0x38   : > { %1871 = vmatpush.bf16.msrb.mxu3 %v3408_v29  ;;  %v1238_v19 = vshrl.u32 %v4036_v13, 16  ;;  %v1240_v20 = vshll.u32 %v4036_v13, 16  ;;  %v635_v23 = vrot.slane %v633_v14, 7  ;;  %512 = vst [vmem:[#allocation2 + $0x2c] sm:$0x1] %v511_v16  ;;  %v424_v39 = vmax.f32 %v408_v12, 0.0 }
  0x39   : > { %1655 = vmatmul.bf16.vlgmr.msra.gmra.mxu3 %v1284_v7  ;;  %v631_v32 = vrot.slane %v627_v21, 4  ;;  %524 = vst [vmem:[#allocation2 + $0x5c] sm:$0x1] %v523_v22  ;;  %v630_v35 = vor.u32 %v628_v11, %v627_v21  ;;  %v4060_v41 = vld [vmem:[%s3842_s28 + $0x38] sm:$0xff]  ;;  %v3445_v45 = vld [vmem:[%s4595_s3 + $0x150] sm:$0xff]  ;;  %v425_v47 = vmax.f32 %v409_v17, 0.0 }
  0x3a   : > { %v1242_v28 = vrot.slane %v1240_v20, 1  ;;  %v1138_v29 = vld [vmem:[#allocation2 + $0x20] sm:$0x1]  ;;  %v638_v37 = vor.u32 %v636_v15, %v635_v23  ;;  %v3414_v46 = vld [vmem:[%s4595_s3 + $0x58] sm:$0xff]  ;;  %v494_v50 = vsel %vm3811_vm3, 0, %v493_v18  ;;  %v640_v55 = vrot.slane %v635_v23, 4 }
  0x3b   : > { %1679 = vmatpush.bf16.msrb.mxu2 %v3447_v54  ;;  %v1210_v33 = vunpack.c.l.b16 %v1138_v29  ;;  %v1142_v34 = vld [vmem:[#allocation2 + $0x50] sm:$0x1]  ;;  %1921 = vmatpush.bf16.msrb.mxu0 %v3415_v27  ;;  %v440_v57 = vpack.c.bf16 %v424_v39, %v424_v39  ;;  %495 = vst [vmem:[#allocation2 + $0x60] sm:$0x1] %v494_v50  ;;  %v441_v60 = vpack.c.bf16 %v425_v47, %v425_v47  ;;  %v3426_v61 = vld [vmem:[%s4595_s3 + $0xb8] sm:$0xff]  ;;  %v416_v63 = vmax.f32 %v4057_v40, 0.0 }
  0x3c   : > { %1872 = vmatpush.bf16.msrb.mxu3 %v3407_v31  ;;  %v4067_v42 = vor.u32 %v1242_v28, %v1238_v19  ;;  %v1214_v43 = vunpack.c.l.b16 %v1142_v34  ;;  %v639_v54 = vsel %vm3870_vm7, %v631_v32, %v638_v37  ;;  %v3405_v56 = vld [vmem:[%s4595_s3 + $0x10] sm:$0xff]  ;;  %v4089_v59 = vld [vmem:[#allocation2 + $0x54] sm:$0xf0]  ;;  %v417_v0 = vmax.f32 %v4060_v41, 0.0  ;;  %1967 = vmatpush.bf16.msrb.mxu1 %v3426_v61  ;;  %v525_v23 = vld [vmem:[#allocation2 + $0x68] sm:$0x1] }
  0x3d   : > { %v4077_v52 = vpack.c.b16 %v1210_v33, %v1210_v33  ;;  %v4087_v58 = vld [vmem:[#allocation2 + $0x54] sm:$0xff]   ;;  %768 = vst [vmem:[#allocation2 + $0x28] sm:$0xf] %v639_v54  ;;  %v713_v6 = vshll.u32 %v440_v57, 16  ;;  %v718_v7 = vshrl.u32 %v441_v60, 16  ;;  %v721_v20 = vshll.u32 %v441_v60, 16 }
  0x3e   : > { %1611 = vmatmul.bf16.gmra.mxu2 %v3994_v38  ;;  %v4085_v51 = vpack.c.b16 %v1214_v43, %v1214_v43  ;;  %v765_v49 = vld [vmem:[#allocation2 + $0x24] sm:$0xf]  ;;  %v710_v38 = vshrl.u32 %v440_v57, 16  ;;  %1591 = vmatmul.bf16.gmra.mxu0 %v4036_v13  ;;  %v3425_v10 = vld [vmem:[%s4595_s3 + $0xb0] sm:$0xff]  ;;  %v513_v22 = vld [vmem:[#allocation2 + $0x38] sm:$0x1]  ;;  %v432_v32 = vpack.c.bf16 %v416_v63, %v416_v63  ;;  %v433_v33 = vpack.c.bf16 %v417_v0, %v417_v0 }
  0x3f   : > { %1680 = vmatpush.bf16.msrb.mxu2 %v3446_v24  ;;  %v1245_v31 = vshll.u32 %v4077_v52, 16  ;;  %1922 = vmatpush.bf16.msrb.mxu0 %v3414_v46  ;;  %v766_v3 = vsel %vm3876_vm8, %v630_v35, %v765_v49  ;;  %v769_v4 = vld [vmem:[#allocation2 + $0x2c] sm:$0x1]  ;;  %v481_v16 = vld [vmem:[#allocation2 + $0x30] sm:$0x1]  ;;  %v4111_v19 = vrot.slane %v718_v7, 7 }
  0x40   : > { %1873 = vmatpush.bf16.msrb.mxu3 %v3406_v25  ;;  %v1293_v2 = vshll.u32 %v4085_v51, 16  ;;  %767 = vst [vmem:[#allocation2 + $0x24] sm:$0xf] %v766_v3  ;;  %v770_v12 = vsel %vm3811_vm3, %v640_v55, %v769_v4  ;;  %v797_v14 = vld [vmem:[#allocation2 + $0x5c] sm:$0x1]  ;;  %v712_v15 = vrot.slane %v710_v38, 7  ;;  %1968 = vmatpush.bf16.msrb.mxu1 %v3425_v10 }
  0x41   : > { %v1247_v11 = vrot.slane %v1245_v31, 1  ;;  %771 = vst [vmem:[#allocation2 + $0x2c] sm:$0x1] %v770_v12  ;;  %v798_v18 = vsel %vm3811_vm3, %v708_v1, %v797_v14  ;;  %v723_v1 = vor.u32 %v721_v20, %v4111_v19  ;;  %v1300_v28 = vshll.u32 %v4087_v58, 16  ;;  %v3444_v43 = vld [vmem:[%s4595_s3 + $0x148] sm:$0xff]  ;;  %v3413_v54 = vld [vmem:[%s4595_s3 + $0x50] sm:$0xff] }
  0x42   : > { %v1295_v17 = vrot.slane %v1293_v2, 1  ;;  %799 = vst [vmem:[#allocation2 + $0x5c] sm:$0x1] %v798_v18  ;;  %v715_v21 = vor.u32 %v713_v6, %v712_v15  ;;  %v716_v25 = vrot.slane %v712_v15, 4  ;;  %v800_v27 = vld [vmem:[#allocation2 + $0x60] sm:$0xf] }
  0x43   : > { %1681 = vmatpush.bf16.msrb.mxu2 %v3445_v45  ;;  %v1248_v24 = vsel %vm911_vm9, %v4067_v42, %v1247_v11  ;;  %v514_v35 = vsel %vm3822_vm4, 0, %v513_v22  ;;  %v526_v37 = vsel %vm3822_vm4, 0, %v525_v23  ;;  %v642_v39 = vshrl.u32 %v432_v32, 16  ;;  %v3404_v50 = vld [vmem:[%s4595_s3 + $0x8] sm:$0xff]  ;;  %1923 = vmatpush.bf16.msrb.mxu0 %v3413_v54  ;;  %v3443_v0 = vld [vmem:[%s4595_s3 + $0x140] sm:$0xff]  ;;  %v3421_v54 = vld [vmem:[%s4595_s3 + $0x90] sm:$0xff] }
  0x44   : > { %1874 = vmatpush.bf16.msrb.mxu3 %v3405_v56  ;;  %v1296_v44 = vsel %vm911_vm9, %v4054_v30, %v1295_v17  ;;  %v801_v29 = vsel %vm3876_vm8, %v715_v21, %v800_v27  ;;  %v724_v34 = vsel %vm3870_vm7, %v716_v25, %v723_v1  ;;  %v482_v30 = vsel %vm3811_vm3, 0, %v481_v16  ;;  %v4137_v46 = vld [vmem:[#allocation2 + $0x24] sm:$0xf0]  ;;  %515 = vst [vmem:[#allocation2 + $0x38] sm:$0x1] %v514_v35  ;;  %v3403_v2 = vld [vmem:[%s4595_s3] sm:$0xff] }
  0x45   : > { %802 = vst [vmem:[#allocation2 + $0x60] sm:$0xf] %v801_v29  ;;  %v645_v40 = vshll.u32 %v432_v32, 16  ;;  %v650_v41 = vshrl.u32 %v433_v33, 16  ;;  %v653_v47 = vshll.u32 %v433_v33, 16  ;;  %v644_v56 = vrot.slane %v642_v39, 7 }
  0x46   : > { %1640 = vmatmul.bf16.gmra.mxu1 %v1248_v24  ;;  %803 = vst [vmem:[#allocation2 + $0x64] sm:$0xf] %v724_v34  ;;  %v3424_v63 = vld [vmem:[%s4595_s3 + $0xa8] sm:$0xff]  ;;  %v1298_v49 = vshrl.u32 %v4087_v58, 16  ;;  %v442_v4 = vld [vmem:[%s4154_s27] sm:$0xff]  ;;  %v1302_v7 = vrot.slane %v1300_v28, 1 }
  0x47   : > { %v1125_v45 = vld [vmem:[#allocation2 + $0x24] sm:$0xff]   ;;  %483 = vst [vmem:[#allocation2 + $0x30] sm:$0x1] %v482_v30  ;;  %v652_v57 = vrot.slane %v650_v41, 7  ;;  %1682 = vmatpush.bf16.msrb.mxu2 %v3444_v43  ;;  %v648_v38 = vrot.slane %v644_v56, 4  ;;  %v647_v10 = vor.u32 %v645_v40, %v644_v56  ;;  %1969 = vmatpush.bf16.msrb.mxu1 %v3424_v63  ;;  %v725_v20 = vrot.slane %v4111_v19, 4 }
  0x48   : > { %v1139_v55 = vld [vmem:[#allocation2 + $0x2c] sm:$0x1]  ;;  %527 = vst [vmem:[#allocation2 + $0x68] sm:$0x1] %v526_v37  ;;  %1875 = vmatpush.bf16.msrb.mxu3 %v3404_v50  ;;  %v3423_v12 = vld [vmem:[%s4595_s3 + $0xa0] sm:$0xff]  ;;  %v1250_v14 = vshrl.u32 %v1125_v45, 16  ;;  %v1303_v19 = vor.u32 %v1302_v7, %v1298_v49 }
  0x49   : > { %1660 = vmatmul.bf16.gmra.mxu3 %v1296_v44  ;;  %v1211_v60 = vunpack.c.l.b16 %v1139_v55  ;;  %v1143_v61 = vld [vmem:[#allocation2 + $0x5c] sm:$0x1]  ;;  %v3412_v3 = vld [vmem:[%s4595_s3 + $0x48] sm:$0xff]  ;;  %v655_v11 = vor.u32 %v653_v47, %v652_v57  ;;  %s4171_s15 = scalar_select %p454_p9, 1, 0  ;;  %v1252_v15 = vshll.u32 %v1125_v45, 16 }
  0x4a   : > { %v1215_v31 = vunpack.c.l.b16 %v1143_v61  ;;  %v657_v17 = vrot.slane %v652_v57, 4  ;;  %v444_v22 = vmax.f32 %v442_v4, 0.0  ;;  %1924 = vmatpush.bf16.msrb.mxu0 %v3412_v3  ;;  %v3411_v25 = vld [vmem:[%s4595_s3 + $0x40] sm:$0xff]  ;;  %v3422_v32 = vld [vmem:[%s4595_s3 + $0x98] sm:$0xff]  ;;  %v501_v43 = vld [vmem:[#allocation2 + $0x8] sm:$0x1] }
  0x4b   : > { %v4164_v6 = vpack.c.b16 %v1211_v60, %v1211_v60  ;;  %1683 = vmatpush.bf16.msrb.mxu2 %v3443_v0  ;;  %v656_v21 = vsel %vm3870_vm7, %v648_v38, %v655_v11  ;;  %v1254_v23 = vrot.slane %v1252_v15, 1  ;;  %v469_v1 = vld [vmem:[#allocation2] sm:$0x1]  ;;  %v776_v29 = vld [vmem:[#allocation2 + $0x38] sm:$0x1]  ;;  %1970 = vmatpush.bf16.msrb.mxu1 %v3423_v12  ;;  %v456_v33 = vstv %s4171_s15  ;;  %s4624_s12 = smov (!%p4432_p10, %s4622_s12), 15 }
  0x4c   : > { %v4173_v16 = vpack.c.b16 %v1215_v31, %v1215_v31  ;;  %1876 = vmatpush.bf16.msrb.mxu3 %v3403_v2  ;;  %775 = vst [vmem:[#allocation2 + $0x34] sm:$0xf] %v656_v21  ;;  %v777_v35 = vsel %vm3811_vm3, %v657_v17, %v776_v29  ;;  %v446_v41 = vpack.c.bf16 %v444_v22, %v444_v22  ;;  %vm457_vm10 = vcmp.eq.s32.totalorder %v456_v33, 1  ;;  %v3458_v2 = vld [vmem:[%s4595_s3 + $0x1b8] sm:$0xff]  ;;  %v3419_v29 = vld [vmem:[%s4595_s3 + $0x80] sm:$0xff]  ;;  %s2976_s9 = sshll.u32 %s4624_s12, 1 }
  0x4d   : > { %v1257_v18 = vshll.u32 %v4164_v6, 16  ;;  %v1255_v34 = vor.u32 %v1254_v23, %v1250_v14  ;;  %778 = vst [vmem:[#allocation2 + $0x38] sm:$0x1] %v777_v35  ;;  %v3549_v50 = vld [vmem:[#allocation2 + $0x60] sm:$0xff]   ;;  %v470_v57 = vsel %vm3811_vm3, 0, %v469_v1  ;;  %v502_v63 = vsel %vm3822_vm4, 0, %v501_v43  ;;  %s375_s19 = sadd.s32 %s2976_s9, %s3804_s10  ;;  %s4543_s9 = scalar_lea.vmem %s4597_s5, %s2961_s17 }
  0x4e   : > { %1616 = vmatmul.bf16.gmra.mxu2 %v4087_v58  ;;  %v1305_v24 = vshll.u32 %v4173_v16, 16  ;;  %v772_v44 = vld [vmem:[#allocation2 + $0x30] sm:$0xf]  ;;  %v443_v58 = vld [vmem:[%s4154_s27 + $0x8] sm:$0xff]  ;;  %1596 = vmatmul.bf16.gmra.mxu0 %v1125_v45  ;;  %v458_v56 = vsel %vm457_vm10, %v446_v41, 0  ;;  %v1312_v31 = vshll.u32 %v3549_v50, 16 }
  0x4f   : > { %v1259_v27 = vrot.slane %v1257_v18, 1  ;;  %v773_v28 = vsel %vm3876_vm8, %v647_v10, %v772_v44  ;;  %v804_v37 = vld [vmem:[#allocation2 + $0x68] sm:$0x1]  ;;  %v445_v40 = vmax.f32 %v443_v58, 0.0  ;;  %1925 = vmatpush.bf16.msrb.mxu0 %v3411_v25  ;;  %1971 = vmatpush.bf16.msrb.mxu1 %v3422_v32  ;;  %471 = vst [vmem:[#allocation2] sm:$0x1] %v470_v57 }
  0x50   : > { %v1307_v30 = vrot.slane %v1305_v24, 1  ;;  %774 = vst [vmem:[#allocation2 + $0x30] sm:$0xf] %v773_v28  ;;  %v805_v39 = vsel %vm3811_vm3, %v725_v20, %v804_v37  ;;  %v534_v60 = vshrl.u32 %v458_v56, 16  ;;  %v537_v61 = vshll.u32 %v458_v56, 16  ;;  %v3466_v3 = vld [vmem:[%s4595_s3 + $0x1f8] sm:$0xff]  ;;  %2474 = vmatpush.bf16.msra.mxu2 %v3458_v2 }
  0x51   : > { %v1260_v45 = vsel %vm911_vm9, %v1255_v34, %v1259_v27  ;;  %806 = vst [vmem:[#allocation2 + $0x68] sm:$0x1] %v805_v39  ;;  %v447_v55 = vpack.c.bf16 %v445_v40, %v445_v40  ;;  %v3420_v10 = vld [vmem:[%s4595_s3 + $0x88] sm:$0xff]  ;;  %v3474_v11 = vld [vmem:[%s4595_s3 + $0x238] sm:$0xff]  ;;  %2523 = vmatpush.bf16.msra.mxu3 %v3466_v3  ;;  %v1310_v22 = vshrl.u32 %v3549_v50, 16  ;;  %v1314_v23 = vrot.slane %v1312_v31, 1 }
  0x52   : > { %v1308_v47 = vsel %vm911_vm9, %v1303_v19, %v1307_v30  ;;  %503 = vst [vmem:[#allocation2 + $0x8] sm:$0x1] %v502_v63  ;;  %v536_v49 = vrot.slane %v534_v60, 7  ;;  %v3650_v25 = vld [vmem:[#allocation2 + $0xc] sm:$0xe]  ;;  %v3465_v31 = vld [vmem:[%s4595_s3 + $0x1f0] sm:$0xff] }
  0x53   : > { %v459_v0 = vsel %vm457_vm10, %v447_v55, 0  ;;  %1972 = vmatpush.bf16.msrb.mxu1 %v3421_v54  ;;  %2572 = vmatpush.bf16.msra.mxu0 %v3474_v11  ;;  %v1315_v43 = vor.u32 %v1314_v23, %v1310_v22  ;;  %v1354_v55 = vrot.slane %v3971_v26, 1  ;;  %v4243_v57 = vld [vmem:[#allocation2 + $0xc] sm:$0xff]   ;;  %v3550_v22 = vld [vmem:[#allocation2 + $0x18] sm:$0xf0]  ;;  %s2978_s15 = sshll.u32 %s375_s19, 3 }
  0x54   : > { %v542_v38 = vshrl.u32 %v459_v0, 16  ;;  %v545_v7 = vshll.u32 %v459_v0, 16  ;;  %v1140_v14 = vld [vmem:[#allocation2 + $0x38] sm:$0x1]  ;;  %v539_v15 = vor.u32 %v537_v61, %v536_v49  ;;  %v540_v20 = vrot.slane %v536_v49, 4  ;;  %s377_s10 = scalar_lea.vmem %s4594_s2, %s2978_s15  ;;  %v3477_v5 = vld [vmem:[%s4596_s4 + $0x10] sm:$0xff] }
  0x55   : > { %v1212_v17 = vunpack.c.l.b16 %v1140_v14  ;;  %v3652_v60 = vld [vmem:[#allocation2 + $0xc] sm:$0xf0]  ;;  %2524 = vmatpush.bf16.msra.mxu3 %v3465_v31  ;;  %v3551_v23 = vld [vmem:[#allocation2 + $0x18] sm:$0xe]  ;;  %s461_s30 = scalar_select %p460_p11, 1, 0 }
  0x56   : > { %1645 = vmatmul.bf16.gmra.mxu1 %v1260_v45  ;;  %v544_v21 = vrot.slane %v542_v38, 7  ;;  %v555_v28 = vld [vmem:[#allocation2] sm:$0xf]  ;;  %v3473_v38 = vld [vmem:[%s4595_s3 + $0x230] sm:$0xff] }
  0x57   : > { %v4210_v4 = vld [vmem:[#allocation2 + $0x30] sm:$0xff]   ;;  %v4220_v1 = vpack.c.b16 %v1212_v17, %v1212_v17  ;;  %1973 = vmatpush.bf16.msrb.mxu1 %v3420_v10  ;;  %v556_v33 = vsel %vm3876_vm8, %v539_v15, %v555_v28  ;;  %2573 = vmatpush.bf16.msra.mxu0 %v3473_v38  ;;  %v3653_v28 = vld [vmem:[#allocation2 + $0xc] sm:$0xe]  ;;  %v3658_v38 = vld [vmem:[#allocation2 + $0x24] sm:$0xf0] }
  0x58   : > { %v1264_v12 = vshll.u32 %v4210_v4, 16  ;;  %v1144_v18 = vld [vmem:[#allocation2 + $0x68] sm:$0x1]  ;;  %v1262_v24 = vshrl.u32 %v4210_v4, 16  ;;  %v547_v27 = vor.u32 %v545_v7, %v544_v21  ;;  %v549_v19 = vrot.slane %v544_v21, 4 }
  0x59   : > { %1665 = vmatmul.bf16.gmra.mxu3 %v1308_v47  ;;  %v1216_v44 = vunpack.c.l.b16 %v1144_v18  ;;  %v559_v34 = vld [vmem:[#allocation2 + $0x8] sm:$0x1]  ;;  %v1269_v30 = vshll.u32 %v4220_v1, 16  ;;  %557 = vst [vmem:[#allocation2] sm:$0xf] %v556_v33  ;;  %v3651_v47 = vor.u32 %v3650_v25, %v3957_v9  ;;  %v3457_v9 = vld [vmem:[%s4595_s3 + $0x1b0] sm:$0xff] }
  0x5a   : > { %v1266_v58 = vrot.slane %v1264_v12, 1  ;;  %v548_v35 = vsel %vm3870_vm7, %v540_v20, %v547_v27  ;;  %v560_v37 = vsel %vm3811_vm3, %v549_v19, %v559_v34  ;;  %2475 = vmatpush.bf16.msra.mxu2 %v3457_v9  ;;  %v824_v12 = vld [vmem:[#allocation2 + $0x14] sm:$0x1]  ;;  %v3552_v27 = vor.u32 %v3551_v23, %v3550_v22 }
  0x5b   : > { %v4225_v32 = vpack.c.b16 %v1216_v44, %v1216_v44  ;;  %558 = vst [vmem:[#allocation2 + $0x4] sm:$0xf] %v548_v35  ;;  %v1271_v41 = vrot.slane %v1269_v30, 1  ;;  %1974 = vmatpush.bf16.msrb.mxu1 %v3419_v29  ;;  %v1353_v61 = vrot.slane %v3651_v47, 1  ;;  %v896_v20 = vunpack.c.l.b16 %v824_v12  ;;  %v825_v47 = vld [vmem:[#allocation2 + $0x20] sm:$0x1] }
  0x5c   : > { %v4236_v40 = vor.u32 %v1266_v58, %v1262_v24  ;;  %561 = vst [vmem:[#allocation2 + $0x8] sm:$0x1] %v560_v37  ;;  %v927_v58 = vshll.u32 %v4243_v57, 16  ;;  %v925_v29 = vshrl.u32 %v4243_v57, 16  ;;  %v1356_v30 = vrot.slane %v3552_v27, 1  ;;  %v3456_v37 = vld [vmem:[%s4595_s3 + $0x1a8] sm:$0xff] }
  0x5d   : > { %v1317_v39 = vshll.u32 %v4225_v32, 16  ;;  %v1355_v11 = vsel %vm1040_vm11, %v1353_v61, %v1354_v55  ;;  %v904_v25 = vpack.c.b16 %v896_v20, %v896_v20  ;;  %v1357_v35 = vrot.slane %v4077_v52, 1  ;;  %v826_v12 = vld [vmem:[#allocation2 + $0x2c] sm:$0x1]  ;;  %v3554_v20 = vld [vmem:[#allocation2 + $0x30] sm:$0xe] }
  0x5e   : > { %1621 = vmatmul.bf16.gmra.mxu2 %v3549_v50  ;;  %1601 = vmatmul.bf16.gmra.mxu0 %v4210_v4  ;;  %v1272_v50 = vsel %vm911_vm9, %v4236_v40, %v1271_v41  ;;  %v929_v33 = vrot.slane %v927_v58, 1  ;;  %v3472_v41 = vld [vmem:[%s4595_s3 + $0x228] sm:$0xff]  ;;  %v3659_v58 = vld [vmem:[#allocation2 + $0x24] sm:$0xe] }
  0x5f   : > { %v1319_v45 = vrot.slane %v1317_v39, 1  ;;  %v932_v34 = vshll.u32 %v904_v25, 16  ;;  %v3464_v39 = vld [vmem:[%s4595_s3 + $0x1e8] sm:$0xff]  ;;  %2476 = vmatpush.bf16.msra.mxu2 %v3456_v37  ;;  %2574 = vmatpush.bf16.msra.mxu0 %v3472_v41  ;;  %v1358_v52 = vsel %vm1040_vm11, %v1356_v30, %v1357_v35  ;;  %v3660_v41 = vor.u32 %v3659_v58, %v3658_v38  ;;  %v3541_v38 = vld [vmem:[#allocation2 + $0x30] sm:$0xe] }
  0x60   : > { %v3535_v7 = vld [vmem:[#allocation2] sm:$0xe]  ;;  %2525 = vmatpush.bf16.msra.mxu3 %v3464_v39  ;;  %v827_v39 = vld [vmem:[#allocation2 + $0x38] sm:$0x1] }
  0x61   : > { %v1320_v54 = vsel %vm911_vm9, %v1315_v43, %v1319_v45  ;;  %v930_v43 = vor.u32 %v929_v33, %v925_v29  ;;  %v934_v45 = vrot.slane %v932_v34, 1  ;;  %v3454_v33 = vld [vmem:[%s4595_s3 + $0x198] sm:$0xff] }
  0x62   : > { %v3484_v56 = vld [vmem:[#allocation2] sm:$0xff]   ;;  %v3462_v34 = vld [vmem:[%s4595_s3 + $0x1d8] sm:$0xff] }
  0x63   : > { %v915_v63 = vshll.u32 %v3484_v56, 16  ;;  %v823_v0 = vld [vmem:[#allocation2 + $0x8] sm:$0x1]  ;;  %v913_v49 = vshrl.u32 %v3484_v56, 16  ;;  %v3534_v3 = vld [vmem:[#allocation2] sm:$0xf0]  ;;  %v935_v55 = vsel %vm911_vm9, %v930_v43, %v934_v45  ;;  %v899_v45 = vunpack.c.l.b16 %v827_v39 }
  0x64   : > { %v895_v26 = vunpack.c.l.b16 %v823_v0  ;;  %v3536_v17 = vor.u32 %v3535_v7, %v3534_v3  ;;  %v3455_v3 = vld [vmem:[%s4595_s3 + $0x1a0] sm:$0xff] }
  0x65   : > { %v917_v2 = vrot.slane %v915_v63, 1  ;;  %v1045_v63 = vrot.slane %v904_v25, 1  ;;  %v3463_v7 = vld [vmem:[%s4595_s3 + $0x1e0] sm:$0xff]  ;;  %2477 = vmatpush.bf16.msra.mxu2 %v3455_v3 }
  0x66   : > { %1650 = vmatmul.bf16.gmra.mxu1 %v1272_v50  ;;  %v903_v10 = vpack.c.b16 %v895_v26, %v895_v26  ;;  %v1041_v24 = vrot.slane %v3536_v17, 1  ;;  %v3656_v50 = vld [vmem:[#allocation2 + $0x24] sm:$0xe]  ;;  %2526 = vmatpush.bf16.msra.mxu3 %v3463_v7  ;;  %v898_v17 = vunpack.c.l.b16 %v826_v12  ;;  %v3469_v7 = vld [vmem:[%s4595_s3 + $0x210] sm:$0xff] }
  0x67   : > { %v918_v14 = vor.u32 %v917_v2, %v913_v49  ;;  %v3657_v9 = vor.u32 %v3656_v50, %v4137_v46  ;;  %v813_v26 = vld [vmem:[#allocation2 + $0x24] sm:$0xff]   ;;  %v907_v50 = vpack.c.b16 %v899_v45, %v899_v45 }
  0x68   : > { %v920_v15 = vshll.u32 %v903_v10, 16  ;;  %v1042_v44 = vrot.slane %v903_v10, 1  ;;  %v3471_v46 = vld [vmem:[%s4595_s3 + $0x220] sm:$0xff]  ;;  %v3537_v10 = vld [vmem:[#allocation2 + $0x18] sm:$0xf0]  ;;  %v906_v23 = vpack.c.b16 %v898_v17, %v898_v17  ;;  %v949_v27 = vshrl.u32 %v813_v26, 16 }
  0x69   : > { %1670 = vmatmul.bf16.gmra.mxu3 %v1320_v54  ;;  %v3654_v54 = vor.u32 %v3653_v28, %v3652_v60  ;;  %v1359_v2 = vrot.slane %v3657_v9, 1  ;;  %v1360_v60 = vrot.slane %v4164_v6, 1  ;;  %2575 = vmatpush.bf16.msra.mxu0 %v3471_v46  ;;  %v3664_v9 = vld [vmem:[#allocation2 + $0x3c] sm:$0xf0]  ;;  %v1054_v12 = vrot.slane %v907_v50, 1  ;;  %v4342_v45 = vld [vmem:[#allocation2 + $0x48] sm:$0xff]  }
  0x6a   : > { %v922_v18 = vrot.slane %v920_v15, 1  ;;  %v1043_v19 = vsel %vm1040_vm11, %v1041_v24, %v1042_v44  ;;  %v951_v24 = vshll.u32 %v813_v26, 16  ;;  %v956_v28 = vshll.u32 %v906_v23, 16  ;;  %2478 = vmatpush.bf16.msra.mxu2 %v3454_v33  ;;  %2527 = vmatpush.bf16.msra.mxu3 %v3462_v34 }
  0x6b   : > { %v1044_v61 = vrot.slane %v3654_v54, 1  ;;  %v1361_v6 = vsel %vm1040_vm11, %v1359_v2, %v1360_v60 }
  0x6c   : > { %v923_v21 = vsel %vm911_vm9, %v918_v14, %v922_v18  ;;  %v3553_v18 = vld [vmem:[#allocation2 + $0x30] sm:$0xf0]  ;;  %v958_v35 = vrot.slane %v956_v28, 1  ;;  %v3460_v28 = vld [vmem:[%s4595_s3 + $0x1c8] sm:$0xff] }
  0x6d   : > { %v1046_v31 = vsel %vm1040_vm11, %v1044_v61, %v1045_v63  ;;  %v3555_v44 = vor.u32 %v3554_v20, %v3553_v18  ;;  %v1366_v63 = vrot.slane %v3992_v36, 1  ;;  %v828_v36 = vld [vmem:[#allocation2 + $0x44] sm:$0x1] }
  0x6e   : > { %1684 = vmatmul.bf16.vlgmr.msrb.gmra.mxu2 %v1355_v11  ;;  %1926 = vmatmul.bf16.vlgmr.msrb.gmra.mxu0 %v923_v21  ;;  %v3538_v11 = vld [vmem:[#allocation2 + $0x18] sm:$0xe] }
  0x6f   : > { %v3539_v14 = vor.u32 %v3538_v11, %v3537_v10  ;;  %v1362_v29 = vrot.slane %v3555_v44, 1  ;;  %v900_v10 = vunpack.c.l.b16 %v828_v36  ;;  %v3556_v11 = vld [vmem:[#allocation2 + $0x48] sm:$0xf0] }
  0x71   : > { %v1047_v21 = vrot.slane %v3539_v14, 1 }
  0x76   : > { %1975 = vmatmul.bf16.vlgmr.msrb.gmra.mxu1 %v1043_v19  ;;  %v953_v19 = vrot.slane %v951_v24, 1 }
  0x78   : > { %v954_v30 = vor.u32 %v953_v19, %v949_v27  ;;  %v1369_v27 = vrot.slane %v4085_v51, 1  ;;  %v3452_v19 = vld [vmem:[%s4595_s3 + $0x188] sm:$0xff]  ;;  %v829_v51 = vld [vmem:[#allocation2 + $0x50] sm:$0x1] }
  0x79   : > { %1877 = vmatmul.bf16.vlgmr.msrb.gmra.mxu3 %v3484_v56  ;;  %v897_v56 = vunpack.c.l.b16 %v825_v47  ;;  %v1051_v47 = vrot.slane %v906_v23, 1 }
  0x7a   : > { %v959_v43 = vsel %vm911_vm9, %v954_v30, %v958_v35 }
  0x7b   : > { %v905_v0 = vpack.c.b16 %v897_v56, %v897_v56  ;;  %v968_v56 = vshll.u32 %v907_v50, 16 }
  0x7d   : > { %v944_v49 = vshll.u32 %v905_v0, 16  ;;  %v1048_v22 = vrot.slane %v905_v0, 1  ;;  %v4304_v0 = vld [vmem:[#allocation2 + $0x3c] sm:$0xff]  }
  0x7e   : > { %1689 = vmatmul.bf16.gmra.mxu2 %v1358_v52  ;;  %1931 = vmatmul.bf16.gmra.mxu0 %v935_v55  ;;  %v1050_v52 = vrot.slane %v3660_v41, 1  ;;  %v975_v17 = vshll.u32 %v4304_v0, 16  ;;  %v973_v24 = vshrl.u32 %v4304_v0, 16  ;;  %v3468_v41 = vld [vmem:[%s4595_s3 + $0x208] sm:$0xff] }
  0x7f   : > { %v1049_v25 = vsel %vm1040_vm11, %v1047_v21, %v1048_v22 }
  0x80   : > { %v1052_v55 = vsel %vm1040_vm11, %v1050_v52, %v1051_v47  ;;  %v977_v44 = vrot.slane %v975_v17, 1 }
  0x82   : > { %v978_v33 = vor.u32 %v977_v44, %v973_v24  ;;  %v3559_v44 = vld [vmem:[#allocation2 + $0x60] sm:$0xf0] }
  0x86   : > { %1980 = vmatmul.bf16.gmra.mxu1 %v1046_v31  ;;  %v3453_v31 = vld [vmem:[%s4595_s3 + $0x190] sm:$0xff] }
  0x87   : > { %2479 = vmatpush.bf16.msra.mxu2 %v3453_v31 }
  0x89   : > { %1882 = vmatmul.bf16.gmra.mxu3 %v4243_v57  ;;  %v946_v57 = vrot.slane %v944_v49, 1  ;;  %v3461_v49 = vld [vmem:[%s4595_s3 + $0x1d0] sm:$0xff] }
  0x8a   : > { %2528 = vmatpush.bf16.msra.mxu3 %v3461_v49 }
  0x8b   : > { %v947_v15 = vsel %vm911_vm9, %v4067_v42, %v946_v57  ;;  %v1363_v42 = vrot.slane %v4220_v1, 1  ;;  %v3470_v1 = vld [vmem:[%s4595_s3 + $0x218] sm:$0xff]  ;;  %v3557_v57 = vld [vmem:[#allocation2 + $0x48] sm:$0xe]  ;;  %2480 = vmatpush.bf16.msra.mxu2 %v3452_v19 }
  0x8c   : > { %2576 = vmatpush.bf16.msra.mxu0 %v3470_v1  ;;  %v3558_v18 = vor.u32 %v3557_v57, %v3556_v11  ;;  %v3543_v11 = vld [vmem:[#allocation2 + $0x48] sm:$0xf0]  ;;  %v3544_v57 = vld [vmem:[#allocation2 + $0x48] sm:$0xe] }
  0x8d   : > { %v1364_v37 = vsel %vm1040_vm11, %v1362_v29, %v1363_v42 }
  0x8e   : > { %1694 = vmatmul.bf16.gmra.mxu2 %v1361_v6  ;;  %1936 = vmatmul.bf16.gmra.mxu0 %v947_v15  ;;  %v908_v15 = vpack.c.b16 %v900_v10, %v900_v10  ;;  %v1368_v58 = vrot.slane %v3558_v18, 1  ;;  %v3545_v18 = vor.u32 %v3544_v57, %v3543_v11  ;;  %v3565_v11 = vld [vmem:[#allocation2 + $0x18] sm:$0xf0]  ;;  %v3566_v57 = vld [vmem:[#allocation2 + $0x18] sm:$0xe] }
  0x8f   : > { %2529 = vmatpush.bf16.msra.mxu3 %v3460_v28 }
  0x90   : > { %2577 = vmatpush.bf16.msra.mxu0 %v3469_v7  ;;  %v1057_v47 = vrot.slane %v908_v15, 1  ;;  %v3451_v7 = vld [vmem:[%s4595_s3 + $0x180] sm:$0xff] }
  0x91   : > { %2481 = vmatpush.bf16.msra.mxu2 %v3451_v7 }
  0x94   : > { %2578 = vmatpush.bf16.msra.mxu0 %v3468_v41 }
  0x96   : > { %1985 = vmatmul.bf16.gmra.mxu1 %v1049_v25  ;;  %v980_v25 = vshll.u32 %v908_v15, 16  ;;  %v830_v15 = vld [vmem:[#allocation2 + $0x5c] sm:$0x1] }
  0x97   : > { %v902_v24 = vunpack.c.l.b16 %v830_v15 }
  0x98   : > { %v982_v34 = vrot.slane %v980_v25, 1  ;;  %v3560_v25 = vld [vmem:[#allocation2 + $0x60] sm:$0xe] }
  0x99   : > { %1887 = vmatmul.bf16.gmra.mxu3 %v4036_v13  ;;  %v3662_v13 = vld [vmem:[#allocation2 + $0x3c] sm:$0xe] }
  0x9a   : > { %v3663_v54 = vor.u32 %v3662_v13, %v3945_v62  ;;  %v3540_v62 = vld [vmem:[#allocation2 + $0x30] sm:$0xf0]  ;;  %v983_v1 = vsel %vm911_vm9, %v978_v33, %v982_v34  ;;  %v3561_v34 = vor.u32 %v3560_v25, %v3559_v44 }
  0x9b   : > { %v3542_v60 = vor.u32 %v3541_v38, %v3540_v62  ;;  %v985_v38 = vshrl.u32 %v4342_v45, 16 }
  0x9c   : > { %v1365_v61 = vrot.slane %v3663_v54, 1 }
  0x9d   : > { %v1053_v6 = vrot.slane %v3542_v60, 1  ;;  %v1372_v60 = vrot.slane %v4173_v16, 1 }
  0x9e   : > { %1699 = vmatmul.bf16.gmra.mxu2 %v1364_v37  ;;  %1941 = vmatmul.bf16.gmra.mxu0 %v959_v43  ;;  %v1367_v2 = vsel %vm1040_vm11, %v1365_v61, %v1366_v63  ;;  %v3668_v37 = vld [vmem:[#allocation2 + $0x54] sm:$0xe]  ;;  %v901_v43 = vunpack.c.l.b16 %v829_v51 }
  0x9f   : > { %v1055_v21 = vsel %vm1040_vm11, %v1053_v6, %v1054_v12  ;;  %v3669_v63 = vor.u32 %v3668_v37, %v4089_v59  ;;  %v3670_v59 = vld [vmem:[#allocation2 + $0x54] sm:$0xf0] }
  0xa1   : > { %v1371_v36 = vrot.slane %v3669_v63, 1 }
  0xa6   : > { %1990 = vmatmul.bf16.gmra.mxu1 %v1052_v55  ;;  %v987_v55 = vshll.u32 %v4342_v45, 16 }
  0xa9   : > { %1892 = vmatmul.bf16.gmra.mxu3 %v813_v26  ;;  %v970_v26 = vrot.slane %v968_v56, 1  ;;  %v909_v56 = vpack.c.b16 %v901_v43, %v901_v43 }
  0xab   : > { %v1587_v3 = vpop.f32.mrf.mxu0  ;;  %v971_v46 = vsel %vm911_vm9, %v4236_v40, %v970_v26  ;;  %v3665_v40 = vld [vmem:[#allocation2 + $0x3c] sm:$0xe]  ;;  %v989_v26 = vrot.slane %v987_v55, 1 }
  0xac   : > { %v3666_v39 = vor.u32 %v3665_v40, %v3664_v9 }
  0xad   : > { %v4364_v6 = vor.u32 %v989_v26, %v985_v38 }
  0xae   : > { %1704 = vmatmul.bf16.gmra.mxu2 %v1367_v2  ;;  %1946 = vmatmul.bf16.gmra.mxu0 %v971_v46  ;;  %v1056_v52 = vrot.slane %v3666_v39, 1  ;;  %v992_v2 = vshll.u32 %v909_v56, 16  ;;  %v3459_v46 = vld [vmem:[%s4595_s3 + $0x1c0] sm:$0xff] }
  0xaf   : > { %2530 = vmatpush.bf16.msra.mxu3 %v3459_v46 }
  0xb0   : > { %v1058_v31 = vsel %vm1040_vm11, %v1056_v52, %v1057_v47  ;;  %v994_v16 = vrot.slane %v992_v2, 1  ;;  %v1374_v52 = vrot.slane %v3561_v34, 1  ;;  %v1375_v47 = vrot.slane %v4225_v32, 1  ;;  %v2033_v32 = vld [vmem:[#allocation2 + $0x20] sm:$0x1]  ;;  %v2019_v34 = vld [vmem:[#allocation2 + $0x24] sm:$0xff]  }
  0xb1   : > { %v1607_v14 = vpop.f32.mrf.mxu2 }
  0xb2   : > { %v995_v40 = vsel %vm911_vm9, %v4364_v6, %v994_v16 }
  0xb3   : > { %v1636_v20 = vpop.f32.mrf.mxu1  ;;  %v4322_v23 = vpop.f32.mrf.mxu0 }
  0xb4   : > { %v4320_v22 = vadd.f32 %v1636_v20, %v1587_v3  ;;  %v4356_v3 = vld [vmem:[#allocation2 + $0x54] sm:$0xff]  }
  0xb5   : > { %v997_v41 = vshrl.u32 %v4356_v3, 16 }
  0xb6   : > { %1995 = vmatmul.bf16.gmra.mxu1 %v1055_v21  ;;  %v3467_v21 = vld [vmem:[%s4595_s3 + $0x200] sm:$0xff] }
  0xb7   : > { %2579 = vmatpush.bf16.msra.mxu0 %v3467_v21 }
  0xb9   : > { %1897 = vmatmul.bf16.gmra.mxu3 %v4210_v4  ;;  %v1609_v29 = vpop.f32.mrf.mxu2  ;;  %v1370_v4 = vsel %vm1040_vm11, %v1368_v58, %v1369_v27  ;;  %v1059_v58 = vrot.slane %v3545_v18, 1  ;;  %v1060_v27 = vrot.slane %v909_v56, 1  ;;  %v3516_v18 = vld [vmem:[#allocation2 + $0x18] sm:$0xff]  }
  0xba   : > { %v2124_v21 = vshll.u32 %v3516_v18, 16 }
  0xbb   : > { %v4336_v35 = vpop.f32.mrf.mxu1  ;;  %v1592_v13 = vpop.f32.mrf.mxu0  ;;  %v1061_v51 = vsel %vm1040_vm11, %v1059_v58, %v1060_v27 }
  0xbc   : > { %v1656_v42 = vpop.f32.mrf.mxu3 }
  0xbd   : > { %v4333_v30 = vadd.f32 %v1656_v42, %v1607_v14  ;;  %v1373_v14 = vsel %vm1040_vm11, %v1371_v36, %v1372_v60  ;;  %v999_v42 = vshll.u32 %v4356_v3, 16 }
  0xbe   : > { %1709 = vmatmul.bf16.gmra.mxu2 %v1370_v4  ;;  %1951 = vmatmul.bf16.gmra.mxu0 %v983_v1 }
  0xbf   : > { %v1001_v1 = vrot.slane %v999_v42, 1 }
  0xc1   : > { %v1612_v50 = vpop.f32.mrf.mxu2  ;;  %v1002_v55 = vor.u32 %v1001_v1, %v997_v41 }
  0xc3   : > { %v1641_v9 = vpop.f32.mrf.mxu1  ;;  %v4351_v62 = vpop.f32.mrf.mxu0 }
  0xc4   : > { %v1658_v54 = vpop.f32.mrf.mxu3  ;;  %v4349_v49 = vadd.f32 %v1641_v9, %v1592_v13  ;;  %v3671_v13 = vld [vmem:[#allocation2 + $0x54] sm:$0xe]  ;;  %v1376_v9 = vsel %vm1040_vm11, %v1374_v52, %v1375_v47  ;;  %v2034_v52 = vld [vmem:[#allocation2 + $0x2c] sm:$0x1] }
  0xc5   : > { %v4345_v61 = vadd.f32 %v1658_v54, %v1609_v29  ;;  %v910_v29 = vpack.c.b16 %v902_v24, %v902_v24  ;;  %v3672_v38 = vor.u32 %v3671_v13, %v3670_v59  ;;  %v3674_v13 = vld [vmem:[#allocation2 + $0x24] sm:$0xe] }
  0xc6   : > { %2000 = vmatmul.bf16.gmra.mxu1 %v1058_v31 }
  0xc7   : > { %v1004_v43 = vshll.u32 %v910_v29, 16  ;;  %v1062_v36 = vrot.slane %v3672_v38, 1  ;;  %v1063_v60 = vrot.slane %v910_v29, 1  ;;  %v2126_v29 = vrot.slane %v2124_v21, 1 }
  0xc9   : > { %1902 = vmatmul.bf16.gmra.mxu3 %v4304_v0  ;;  %v1614_v10 = vpop.f32.mrf.mxu2  ;;  %v1006_v56 = vrot.slane %v1004_v43, 1  ;;  %v1064_v16 = vsel %vm1040_vm11, %v1062_v36, %v1063_v60 }
  0xcb   : > { %v4369_v17 = vpop.f32.mrf.mxu1  ;;  %v1597_v20 = vpop.f32.mrf.mxu0  ;;  %v1007_v2 = vsel %vm911_vm9, %v1002_v55, %v1006_v56  ;;  %v2106_v56 = vunpack.c.l.b16 %v2034_v52 }
  0xcc   : > { %v1661_v0 = vpop.f32.mrf.mxu3 }
  0xcd   : > { %v4366_v12 = vadd.f32 %v1661_v0, %v1612_v50  ;;  %v2114_v36 = vpack.c.b16 %v2106_v56, %v2106_v56  ;;  %v3480_v56 = vld [vmem:[%s4596_s4 + $0x28] sm:$0xff] }
  0xce   : > { %1714 = vmatmul.bf16.gmra.mxu2 %v1373_v14  ;;  %1956 = vmatmul.bf16.gmra.mxu0 %v995_v40  ;;  %v2105_v14 = vunpack.c.l.b16 %v2033_v32 }
  0xd0   : > { %v2113_v40 = vpack.c.b16 %v2105_v14, %v2105_v14  ;;  %v2141_v14 = vshll.u32 %v2114_v36, 16 }
  0xd1   : > { %v1617_v19 = vpop.f32.mrf.mxu2 }
  0xd2   : > { %v2250_v58 = vrot.slane %v2113_v40, 1  ;;  %v2129_v42 = vshll.u32 %v2113_v40, 16  ;;  %v2143_v21 = vrot.slane %v2141_v14, 1 }
  0xd3   : > { %v1646_v4 = vpop.f32.mrf.mxu1  ;;  %v4382_v39 = vpop.f32.mrf.mxu0 }
  0xd4   : > { %v1663_v28 = vpop.f32.mrf.mxu3  ;;  %v4380_v37 = vadd.f32 %v1646_v4, %v1597_v20  ;;  %v3567_v20 = vor.u32 %v3566_v57, %v3565_v11  ;;  %v3673_v4 = vld [vmem:[#allocation2 + $0x24] sm:$0xf0]  ;;  %v2131_v1 = vrot.slane %v2129_v42, 1  ;;  %v2253_v11 = vrot.slane %v2114_v36, 1  ;;  %v2023_v36 = vld [vmem:[#allocation2 + $0x3c] sm:$0xff]  }
  0xd5   : > { %v4377_v33 = vadd.f32 %v1663_v28, %v1614_v10  ;;  %v2122_v28 = vshrl.u32 %v3516_v18, 16  ;;  %v3675_v38 = vor.u32 %v3674_v13, %v3673_v4  ;;  %v1644_v13 = vadd.f32 %v4369_v17, %v4351_v62  ;;  %v3676_v62 = vld [vmem:[#allocation2 + $0x3c] sm:$0xf0] }
  0xd6   : > { %2005 = vmatmul.bf16.gmra.mxu1 %v1061_v51  ;;  %v2249_v25 = vrot.slane %v3567_v20, 1 }
  0xd7   : > { %v2127_v41 = vor.u32 %v2126_v29, %v2122_v28  ;;  %v3569_v28 = vld [vmem:[#allocation2 + $0x30] sm:$0xe] }
  0xd8   : > { %v2251_v51 = vsel %vm1040_vm11, %v2249_v25, %v2250_v58 }
  0xd9   : > { %1907 = vmatmul.bf16.gmra.mxu3 %v4342_v45  ;;  %v1619_v50 = vpop.f32.mrf.mxu2  ;;  %v2132_v55 = vsel %vm911_vm9, %v2127_v41, %v2131_v1 }
  0xdb   : > { %v4390_v31 = vpop.f32.mrf.mxu1  ;;  %v1602_v26 = vpop.f32.mrf.mxu0 }
  0xdc   : > { %v1666_v54 = vpop.f32.mrf.mxu3 }
  0xdd   : > { %v4387_v63 = vadd.f32 %v1666_v54, %v1617_v19  ;;  %v3482_v19 = vld [vmem:[%s4596_s4 + $0x38] sm:$0xff] }
  0xde   : > { %1719 = vmatmul.bf16.gmra.mxu2 %v1376_v9  ;;  %1961 = vmatmul.bf16.gmra.mxu0 %v1007_v2  ;;  %v2136_v2 = vshll.u32 %v2019_v34, 16 }
  0xdf   : > { %2725 = vmatpush.bf16.msra.mxu1 %v3482_v19  ;;  %v3568_v19 = vld [vmem:[#allocation2 + $0x30] sm:$0xf0] }
  0xe1   : > { %v1622_v7 = vpop.f32.mrf.mxu2 }
  0xe3   : > { %v1651_v0 = vpop.f32.mrf.mxu1  ;;  %v4398_v59 = vpop.f32.mrf.mxu0 }
  0xe4   : > { %v1668_v46 = vpop.f32.mrf.mxu3  ;;  %v4396_v15 = vadd.f32 %v1651_v0, %v1602_v26  ;;  %v1639_v26 = vadd.f32 %v4336_v35, %v4322_v23  ;;  %v2134_v0 = vshrl.u32 %v2019_v34, 16 }
  0xe5   : > { %v4393_v10 = vadd.f32 %v1668_v46, %v1619_v50  ;;  %v2252_v46 = vrot.slane %v3675_v38, 1 }
  0xe6   : > { %2010 = vmatmul.bf16.gmra.mxu1 %v1064_v16  ;;  %v2138_v16 = vrot.slane %v2136_v2, 1 }
  0xe7   : > { %v2254_v35 = vsel %vm1040_vm11, %v2252_v46, %v2253_v11 }
  0xe8   : > { %v2139_v20 = vor.u32 %v2138_v16, %v2134_v0 }
  0xe9   : > { %1912 = vmatmul.bf16.gmra.mxu3 %v4356_v3  ;;  %v1624_v24 = vpop.f32.mrf.mxu2 }
  0xea   : > { %v2144_v29 = vsel %vm911_vm9, %v2139_v20, %v2143_v21 }
  0xeb   : > { %v1927_v3 = vpop.f32.mrf.mxu0 }
  0xec   : > { %v1671_v44 = vpop.f32.mrf.mxu3 }
  0xed   : > { %v4401_v27 = vadd.f32 %v1671_v44, %v1622_v7 }
  0xee   : > { %2482 = vmatmul.bf16.vlgmr.msra.gmra.mxu2 %v3516_v18  ;;  %2580 = vmatmul.bf16.vlgmr.msra.gmra.mxu0 %v2251_v51  ;;  %v3570_v51 = vor.u32 %v3569_v28, %v3568_v19 }
  0xf1   : > { %v1685_v43 = vpop.f32.mrf.mxu2 }
  0xf2   : > { %v1686_v50 = vadd.f32 %v1685_v43, %v4320_v22  ;;  %v3481_v22 = vld [vmem:[%s4596_s4 + $0x30] sm:$0xff] }
  0xf3   : > { %v1929_v9 = vpop.f32.mrf.mxu0  ;;  %2726 = vmatpush.bf16.msra.mxu1 %v3481_v22 }
  0xf4   : > { %v1673_v47 = vpop.f32.mrf.mxu3 }
  0xf5   : > { %v4408_v54 = vadd.f32 %v1673_v47, %v1624_v24  ;;  %v2035_v24 = vld [vmem:[#allocation2 + $0x38] sm:$0x1]  ;;  %v2255_v47 = vrot.slane %v3570_v51, 1 }
  0xf6   : > { %v2107_v42 = vunpack.c.l.b16 %v2035_v24  ;;  %v2160_v24 = vshll.u32 %v2023_v36, 16 }
  0xf7   : > { %2727 = vmatpush.bf16.msra.mxu1 %v3480_v56 }
  0xf8   : > { %v2115_v1 = vpack.c.b16 %v2107_v42, %v2107_v42  ;;  %v3479_v42 = vld [vmem:[%s4596_s4 + $0x20] sm:$0xff] }
  0xf9   : > { %2531 = vmatmul.bf16.vlgmr.msra.gmra.mxu3 %v2132_v55  ;;  %v1687_v60 = vpop.f32.mrf.mxu2 }
  0xfa   : > { %v1688_v32 = vadd.f32 %v1687_v60, %v1639_v26  ;;  %v2153_v26 = vshll.u32 %v2115_v1, 16 }
  0xfb   : > { %v1932_v23 = vpop.f32.mrf.mxu0  ;;  %2728 = vmatpush.bf16.msra.mxu1 %v3479_v42  ;;  %v2027_v42 = vld [vmem:[#allocation2 + $0x54] sm:$0xff]  }
  0xfc   : > { %v1878_v7 = vpop.f32.mrf.mxu3  ;;  %v2155_v46 = vrot.slane %v2153_v26, 1  ;;  %v1653_v26 = vpop.f32.mrf.mxu1  ;;  %v2182_v53 = vshrl.u32 %v2027_v42, 16 }
  0xfd   : > { %v1879_v57 = vadd.f32 %v1878_v7, %v1686_v50  ;;  %v2256_v50 = vrot.slane %v2115_v1, 1  ;;  %v3677_v7 = vld [vmem:[#allocation2 + $0x3c] sm:$0xe] }
  0xfe   : > { %2487 = vmatmul.bf16.gmra.mxu2 %v2019_v34  ;;  %2585 = vmatmul.bf16.gmra.mxu0 %v2254_v35  ;;  %v3562_v34 = vld [vmem:[#allocation2 + $0x30] sm:$0xff]   ;;  %v3678_v21 = vor.u32 %v3677_v7, %v3676_v62  ;;  %v449_v7 = vld [vmem:[%s377_s10 + $0x8] sm:$0xff] }
  0xff   : > { %v4416_v18 = vadd.f32 %v1927_v3, %v1879_v57  ;;  %v2148_v41 = vshll.u32 %v3562_v34, 16  ;;  %v2257_v60 = vsel %vm1040_vm11, %v2255_v47, %v2256_v50  ;;  %v2036_v57 = vld [vmem:[#allocation2 + $0x44] sm:$0x1]  ;;  %v3571_v50 = vld [vmem:[#allocation2 + $0x48] sm:$0xf0] }
 0x100   : > { %v2258_v19 = vrot.slane %v3678_v21, 1 }
 0x101   : > { %v1690_v40 = vpop.f32.mrf.mxu2  ;;  %v2150_v38 = vrot.slane %v2148_v41, 1 }
 0x102   : > { %v1691_v25 = vadd.f32 %v1690_v40, %v4349_v49  ;;  %v1649_v40 = vadd.f32 %v4390_v31, %v4382_v39 }
 0x103   : > { %v1934_v3 = vpop.f32.mrf.mxu0 }
 0x104   : > { %v1880_v44 = vpop.f32.mrf.mxu3 }
 0x105   : > { %v1881_v58 = vadd.f32 %v1880_v44, %v1688_v32 }
 0x107   : > { %v4421_v4 = vadd.f32 %v1929_v9, %v1881_v58  ;;  %v2146_v9 = vshrl.u32 %v3562_v34, 16 }
 0x109   : > { %2536 = vmatmul.bf16.gmra.mxu3 %v2144_v29  ;;  %v1692_v43 = vpop.f32.mrf.mxu2  ;;  %v2151_v32 = vor.u32 %v2150_v38, %v2146_v9 }
 0x10a   : > { %v1693_v52 = vadd.f32 %v1692_v43, %v1644_v13  ;;  %v2037_v43 = vld [vmem:[#allocation2 + $0x50] sm:$0x1] }
 0x10b   : > { %v1937_v17 = vpop.f32.mrf.mxu0  ;;  %v2156_v14 = vsel %vm911_vm9, %v2151_v32, %v2155_v46  ;;  %v2109_v9 = vunpack.c.l.b16 %v2037_v43  ;;  %v1654_v32 = vadd.f32 %v1653_v26, %v4398_v59 }
 0x10c   : > { %v1883_v49 = vpop.f32.mrf.mxu3 }
 0x10d   : > { %v1884_v55 = vadd.f32 %v1883_v49, %v1691_v25 }
 0x10e   : > { %2492 = vmatmul.bf16.gmra.mxu2 %v3562_v34  ;;  %2590 = vmatmul.bf16.gmra.mxu0 %v2257_v60  ;;  %v2158_v34 = vshrl.u32 %v2023_v36, 16  ;;  %v2117_v60 = vpack.c.b16 %v2109_v9, %v2109_v9 }
 0x10f   : > { %v4429_v2 = vadd.f32 %v1932_v23, %v1884_v55  ;;  %v2108_v23 = vunpack.c.l.b16 %v2036_v57  ;;  %v3572_v55 = vld [vmem:[#allocation2 + $0x48] sm:$0xe] }
 0x110   : > { %v3573_v62 = vor.u32 %v3572_v55, %v3571_v50 }
 0x111   : > { %v1695_v11 = vpop.f32.mrf.mxu2  ;;  %v2116_v44 = vpack.c.b16 %v2108_v23, %v2108_v23 }
 0x112   : > { %v1696_v0 = vadd.f32 %v1695_v11, %v4380_v37  ;;  %v451_v11 = vmax.f32 %v449_v7, 0.0 }
 0x113   : > { %v1939_v20 = vpop.f32.mrf.mxu0  ;;  %v2259_v28 = vrot.slane %v2116_v44, 1  ;;  %v2165_v51 = vshll.u32 %v2116_v44, 16  ;;  %v3478_v44 = vld [vmem:[%s4596_s4 + $0x18] sm:$0xff] }
 0x114   : > { %v1885_v22 = vpop.f32.mrf.mxu3  ;;  %2729 = vmatpush.bf16.msra.mxu1 %v3478_v44 }
 0x115   : > { %v1886_v16 = vadd.f32 %v1885_v22, %v1693_v52  ;;  %v2260_v31 = vsel %vm1040_vm11, %v2258_v19, %v2259_v28  ;;  %v2167_v1 = vrot.slane %v2165_v51, 1  ;;  %v2261_v22 = vrot.slane %v3573_v62, 1 }
 0x117   : > { %v4440_v35 = vadd.f32 %v1934_v3, %v1886_v16  ;;  %v2162_v3 = vrot.slane %v2160_v24, 1  ;;  %v496_v16 = vld [vmem:[#allocation2 + $0x6c] sm:$0x1] }
 0x118   : > { %v497_v59 = vsel %vm3811_vm3, 0, %v496_v16  ;;  %v2184_v16 = vshll.u32 %v2027_v42, 16  ;;  %2730 = vmatpush.bf16.msra.mxu1 %v3477_v5 }
 0x119   : > { %2541 = vmatmul.bf16.gmra.mxu3 %v2156_v14  ;;  %v1697_v25 = vpop.f32.mrf.mxu2  ;;  %v2163_v41 = vor.u32 %v2162_v3, %v2158_v34  ;;  %498 = vst [vmem:[#allocation2 + $0x6c] sm:$0x1] %v497_v59  ;;  %v3679_v34 = vld [vmem:[#allocation2 + $0x54] sm:$0xf0] }
 0x11a   : > { %v1698_v58 = vadd.f32 %v1697_v25, %v1649_v40  ;;  %v462_v40 = vstv %s461_s30  ;;  %v528_v25 = vld [vmem:[#allocation2 + $0x74] sm:$0x1] }
 0x11b   : > { %v1942_v39 = vpop.f32.mrf.mxu0  ;;  %v2168_v38 = vsel %vm911_vm9, %v2163_v41, %v2167_v1  ;;  %vm463_vm12 = vcmp.eq.s32.totalorder %v462_v40, 1  ;;  %v529_v28 = vsel %vm3822_vm4, 0, %v528_v25  ;;  %v3680_v1 = vld [vmem:[#allocation2 + $0x54] sm:$0xe]  ;;  %v2186_v40 = vrot.slane %v2184_v16, 1 }
 0x11c   : > { %v1888_v37 = vpop.f32.mrf.mxu3  ;;  %530 = vst [vmem:[#allocation2 + $0x74] sm:$0x1] %v529_v28 }
 0x11d   : > { %v1889_v29 = vadd.f32 %v1888_v37, %v1696_v0  ;;  %v2262_v0 = vrot.slane %v2117_v60, 1  ;;  %v2177_v37 = vshll.u32 %v2117_v60, 16 }
 0x11e   : > { %2497 = vmatmul.bf16.gmra.mxu2 %v2023_v36  ;;  %2595 = vmatmul.bf16.gmra.mxu0 %v2260_v31 }
 0x11f   : > { %v4449_v13 = vadd.f32 %v1937_v17, %v1889_v29  ;;  %v2263_v41 = vsel %vm1040_vm11, %v2261_v22, %v2262_v0  ;;  %v3681_v0 = vor.u32 %v3680_v1, %v3679_v34 }
 0x120   : > { %v583_v60 = vld [vmem:[#allocation2 + $0x6c] sm:$0xf] }
 0x121   : > { %v1700_v49 = vpop.f32.mrf.mxu2  ;;  %v2264_v48 = vrot.slane %v3681_v0, 1 }
 0x122   : > { %v1701_v47 = vadd.f32 %v1700_v49, %v4396_v15  ;;  %v448_v15 = vld [vmem:[%s377_s10] sm:$0xff] }
 0x123   : > { %v1944_v17 = vpop.f32.mrf.mxu0  ;;  %v450_v46 = vmax.f32 %v448_v15, 0.0 }
 0x124   : > { %v1890_v52 = vpop.f32.mrf.mxu3 }
 0x125   : > { %v1891_v56 = vadd.f32 %v1890_v52, %v1698_v58  ;;  %v452_v21 = vpack.c.bf16 %v450_v46, %v450_v46 }
 0x127   : > { %v4459_v36 = vadd.f32 %v1939_v20, %v1891_v56  ;;  %v453_v20 = vpack.c.bf16 %v451_v11, %v451_v11  ;;  %v464_v58 = vsel %vm463_vm12, %v452_v21, 0 }
 0x128   : > { %v563_v3 = vshrl.u32 %v464_v58, 16  ;;  %v566_v49 = vshll.u32 %v464_v58, 16 }
 0x129   : > { %2546 = vmatmul.bf16.gmra.mxu3 %v2168_v38  ;;  %v1702_v57 = vpop.f32.mrf.mxu2  ;;  %v465_v19 = vsel %vm463_vm12, %v453_v20, 0 }
 0x12a   : > { %v1703_v23 = vadd.f32 %v1702_v57, %v1654_v32  ;;  %v571_v51 = vshrl.u32 %v465_v19, 16  ;;  %v565_v43 = vrot.slane %v563_v3, 7  ;;  %v574_v8 = vshll.u32 %v465_v19, 16  ;;  %v587_v32 = vld [vmem:[#allocation2 + $0x74] sm:$0x1] }
 0x12b   : > { %v1947_v31 = vpop.f32.mrf.mxu0  ;;  %v2039_v19 = vld [vmem:[#allocation2 + $0x68] sm:$0x1] }
 0x12c   : > { %v1893_v14 = vpop.f32.mrf.mxu3  ;;  %v573_v52 = vrot.slane %v571_v51, 7  ;;  %v568_v55 = vor.u32 %v566_v49, %v565_v43  ;;  %v569_v56 = vrot.slane %v565_v43, 4  ;;  %v3574_v51 = vld [vmem:[#allocation2 + $0x60] sm:$0xf0] }
 0x12d   : > { %v1894_v24 = vadd.f32 %v1893_v14, %v1701_v47  ;;  %v2179_v47 = vrot.slane %v2177_v37, 1  ;;  %v2187_v37 = vor.u32 %v2186_v40, %v2182_v53 }
 0x12e   : > { %2502 = vmatmul.bf16.gmra.mxu2 %v4342_v45  ;;  %2600 = vmatmul.bf16.gmra.mxu0 %v2263_v41  ;;  %v576_v62 = vor.u32 %v574_v8, %v573_v52  ;;  %v578_v45 = vrot.slane %v573_v52, 4  ;;  %v584_v57 = vsel %vm3876_vm8, %v568_v55, %v583_v60  ;;  %v3575_v41 = vld [vmem:[#allocation2 + $0x60] sm:$0xe] }
 0x12f   : > { %v4469_v29 = vadd.f32 %v1942_v39, %v1894_v24  ;;  %v2038_v39 = vld [vmem:[#allocation2 + $0x5c] sm:$0x1]  ;;  %v2180_v15 = vsel %vm911_vm9, %v4364_v6, %v2179_v47  ;;  %585 = vst [vmem:[#allocation2 + $0x6c] sm:$0xf] %v584_v57  ;;  %v3576_v52 = vor.u32 %v3575_v41, %v3574_v51 }
 0x130   : > { %v2110_v7 = vunpack.c.l.b16 %v2038_v39  ;;  %v577_v11 = vsel %vm3870_vm7, %v569_v56, %v576_v62 }
 0x131   : > { %v1705_v50 = vpop.f32.mrf.mxu2  ;;  %586 = vst [vmem:[#allocation2 + $0x70] sm:$0xf] %v577_v11  ;;  %v2267_v56 = vrot.slane %v3576_v52, 1 }
 0x132   : > { %v1706_v38 = vadd.f32 %v1705_v50, %v4333_v30  ;;  %v588_v30 = vsel %vm3811_vm3, %v578_v45, %v587_v32  ;;  %v2118_v6 = vpack.c.b16 %v2110_v7, %v2110_v7 }
 0x133   : > { %v1949_v22 = vpop.f32.mrf.mxu0  ;;  %589 = vst [vmem:[#allocation2 + $0x74] sm:$0x1] %v588_v30 }
 0x134   : > { %v1895_v9 = vpop.f32.mrf.mxu3  ;;  %v2265_v21 = vrot.slane %v2118_v6, 1  ;;  %v2189_v24 = vshll.u32 %v2118_v6, 16 }
 0x135   : > { %v1896_v26 = vadd.f32 %v1895_v9, %v1703_v23 }
 0x136   : > { %v2266_v25 = vsel %vm1040_vm11, %v2264_v48, %v2265_v21  ;;  %v2191_v58 = vrot.slane %v2189_v24, 1 }
 0x137   : > { %v4476_v46 = vadd.f32 %v1944_v17, %v1896_v26 }
 0x138   : > { %v2192_v1 = vsel %vm911_vm9, %v2187_v37, %v2191_v58  ;;  %v3682_v7 = vld [vmem:[#allocation2 + $0x6c] sm:$0xf0]  ;;  %v1976_v58 = vpop.f32.mrf.mxu1 }
 0x139   : > { %2551 = vmatmul.bf16.gmra.mxu3 %v2180_v15  ;;  %v1707_v14 = vpop.f32.mrf.mxu2  ;;  %v2031_v15 = vld [vmem:[#allocation2 + $0x6c] sm:$0xff]  }
 0x13a   : > { %v1708_v23 = vadd.f32 %v1707_v14, %v4345_v61  ;;  %v2040_v0 = vld [vmem:[#allocation2 + $0x74] sm:$0x1]  ;;  %v2208_v5 = vshll.u32 %v2031_v15, 16 }
 0x13b   : > { %v1952_v59 = vpop.f32.mrf.mxu0 }
 0x13c   : > { %v1898_v17 = vpop.f32.mrf.mxu3 }
 0x13d   : > { %v1899_v20 = vadd.f32 %v1898_v17, %v1706_v38  ;;  %v3476_v38 = vld [vmem:[%s4596_s4 + $0x8] sm:$0xff] }
 0x13e   : > { %2507 = vmatmul.bf16.gmra.mxu2 %v2027_v42  ;;  %2605 = vmatmul.bf16.gmra.mxu0 %v2266_v25  ;;  %v3564_v42 = vld [vmem:[#allocation2 + $0x60] sm:$0xff]  }
 0x13f   : > { %v4488_v44 = vadd.f32 %v1947_v31, %v1899_v20  ;;  %v2111_v31 = vunpack.c.l.b16 %v2039_v19  ;;  %v2196_v47 = vshll.u32 %v3564_v42, 16  ;;  %v2194_v26 = vshrl.u32 %v3564_v42, 16  ;;  %2731 = vmatpush.bf16.msra.mxu1 %v3476_v38 }
 0x140   : > { %v2210_v19 = vrot.slane %v2208_v5, 1 }
 0x141   : > { %v1710_v61 = vpop.f32.mrf.mxu2  ;;  %v2119_v8 = vpack.c.b16 %v2111_v31, %v2111_v31  ;;  %v2198_v62 = vrot.slane %v2196_v47, 1 }
 0x142   : > { %v1711_v34 = vadd.f32 %v1710_v61, %v4366_v12 }
 0x143   : > { %v1954_v49 = vpop.f32.mrf.mxu0  ;;  %v2268_v12 = vrot.slane %v2119_v8, 1  ;;  %v2201_v45 = vshll.u32 %v2119_v8, 16  ;;  %v2199_v57 = vor.u32 %v2198_v62, %v2194_v26  ;;  %v1978_v8 = vpop.f32.mrf.mxu1 }
 0x144   : > { %v1900_v28 = vpop.f32.mrf.mxu3 }
 0x145   : > { %v1901_v3 = vadd.f32 %v1900_v28, %v1708_v23  ;;  %v2269_v11 = vsel %vm1040_vm11, %v2267_v56, %v2268_v12  ;;  %v2203_v30 = vrot.slane %v2201_v45, 1  ;;  %v2112_v23 = vunpack.c.l.b16 %v2040_v0 }
 0x147   : > { %v4493_v43 = vadd.f32 %v1949_v22, %v1901_v3  ;;  %v2204_v17 = vsel %vm911_vm9, %v2199_v57, %v2203_v30  ;;  %v2120_v53 = vpack.c.b16 %v2112_v23, %v2112_v23  ;;  %v1979_v23 = vadd.f32 %v1978_v8, %v4421_v4 }
 0x149   : > { %2556 = vmatmul.bf16.gmra.mxu3 %v2192_v1  ;;  %v1712_v50 = vpop.f32.mrf.mxu2  ;;  %v2271_v37 = vrot.slane %v2120_v53, 1  ;;  %v2213_v28 = vshll.u32 %v2120_v53, 16 }
 0x14a   : > { %v1713_v55 = vadd.f32 %v1712_v50, %v4377_v33  ;;  %v3683_v33 = vld [vmem:[#allocation2 + $0x6c] sm:$0xe] }
 0x14b   : > { %v1957_v32 = vpop.f32.mrf.mxu0  ;;  %v3684_v20 = vor.u32 %v3683_v33, %v3682_v7  ;;  %v2215_v1 = vrot.slane %v2213_v28, 1  ;;  %v1981_v62 = vpop.f32.mrf.mxu1 }
 0x14c   : > { %v1903_v39 = vpop.f32.mrf.mxu3 }
 0x14d   : > { %v1904_v9 = vadd.f32 %v1903_v39, %v1711_v34  ;;  %v2270_v25 = vrot.slane %v3684_v20, 1 }
 0x14e   : > { %2512 = vmatmul.bf16.gmra.mxu2 %v3564_v42  ;;  %2610 = vmatmul.bf16.gmra.mxu0 %v2269_v11 }
 0x14f   : > { %v4499_v60 = vadd.f32 %v1952_v59, %v1904_v9  ;;  %v2272_v51 = vsel %vm1040_vm11, %v2270_v25, %v2271_v37 }
 0x151   : > { %v1715_v22 = vpop.f32.mrf.mxu2 }
 0x152   : > { %v1716_v6 = vadd.f32 %v1715_v22, %v4387_v63  ;;  %v2206_v63 = vshrl.u32 %v2031_v15, 16 }
 0x153   : > { %v1959_v21 = vpop.f32.mrf.mxu0  ;;  %v1983_v11 = vpop.f32.mrf.mxu1 }
 0x154   : > { %v1905_v16 = vpop.f32.mrf.mxu3  ;;  %v2211_v41 = vor.u32 %v2210_v19, %v2206_v63  ;;  %v1984_v4 = vadd.f32 %v1983_v11, %v4440_v35 }
 0x155   : > { %v1906_v14 = vadd.f32 %v1905_v16, %v1713_v55 }
 0x156   : > { %v2216_v47 = vsel %vm911_vm9, %v2211_v41, %v2215_v1 }
 0x157   : > { %v4504_v48 = vadd.f32 %v1954_v49, %v1906_v14 }
 0x159   : > { %2561 = vmatmul.bf16.gmra.mxu3 %v2204_v17  ;;  %v1717_v40 = vpop.f32.mrf.mxu2 }
 0x15a   : > { %v1718_v59 = vadd.f32 %v1717_v40, %v4393_v10  ;;  %v3475_v10 = vld [vmem:[%s4596_s4] sm:$0xff] }
 0x15b   : > { %v1962_v3 = vpop.f32.mrf.mxu0  ;;  %2732 = vmatpush.bf16.msra.mxu1 %v3475_v10  ;;  %v1986_v14 = vpop.f32.mrf.mxu1 }
 0x15c   : > { %v1908_v24 = vpop.f32.mrf.mxu3 }
 0x15d   : > { %v1909_v61 = vadd.f32 %v1908_v24, %v1716_v6 }
 0x15e   : > { %2517 = vmatmul.bf16.gmra.mxu2 %v2031_v15  ;;  %2615 = vmatmul.bf16.gmra.mxu0 %v2272_v51 }
 0x15f   : > { %v4507_v34 = vadd.f32 %v1957_v32, %v1909_v61 }
 0x161   : > { %v1720_v31 = vpop.f32.mrf.mxu2 }
 0x162   : > { %v1721_v49 = vadd.f32 %v1720_v31, %v4401_v27 }
 0x163   : > { %v1964_v39 = vpop.f32.mrf.mxu0  ;;  %v1988_v61 = vpop.f32.mrf.mxu1 }
 0x164   : > { %v1910_v42 = vpop.f32.mrf.mxu3 }
 0x165   : > { %v1911_v52 = vadd.f32 %v1910_v42, %v1718_v59 }
 0x167   : > { %v4515_v50 = vadd.f32 %v1959_v21, %v1911_v52 }
 0x169   : > { %2566 = vmatmul.bf16.gmra.mxu3 %v2216_v47  ;;  %v1722_v55 = vpop.f32.mrf.mxu2 }
 0x16a   : > { %v1723_v12 = vadd.f32 %v1722_v55, %v4408_v54  ;;  %v1977_v54 = vadd.f32 %v1976_v58, %v4416_v18  ;;  %v1982_v58 = vadd.f32 %v1981_v62, %v4429_v2  ;;  %v1987_v62 = vadd.f32 %v1986_v14, %v4449_v13 }
 0x16b   : > { %v2581_v26 = vpop.f32.mrf.mxu0  ;;  %v1991_v10 = vpop.f32.mrf.mxu1 }
 0x16c   : > { %v1913_v56 = vpop.f32.mrf.mxu3  ;;  %v1992_v13 = vadd.f32 %v1991_v10, %v4469_v29 }
 0x16d   : > { %v1914_v9 = vadd.f32 %v1913_v56, %v1721_v49 }
 0x16f   : > { %v4518_v38 = vadd.f32 %v1962_v3, %v1914_v9 }
 0x171   : > { %v2483_v45 = vpop.f32.mrf.mxu2 }
 0x173   : > { %v2583_v32 = vpop.f32.mrf.mxu0 }
 0x174   : > { %v1915_v27 = vpop.f32.mrf.mxu3 }
 0x175   : > { %v1916_v15 = vadd.f32 %v1915_v27, %v1723_v12  ;;  %v1993_v12 = vpop.f32.mrf.mxu1 }
 0x177   : > { %v4520_v7 = vadd.f32 %v1964_v39, %v1916_v15 }
 0x179   : > { %v2485_v33 = vpop.f32.mrf.mxu2 }
 0x17b   : > { %v2586_v22 = vpop.f32.mrf.mxu0 }
 0x17c   : > { %v2532_v57 = vpop.f32.mrf.mxu3 }
 0x17d   : > { %v2533_v30 = vadd.f32 %v2532_v57, %v2483_v45  ;;  %v1989_v45 = vadd.f32 %v1988_v61, %v4459_v36  ;;  %v1994_v36 = vadd.f32 %v1993_v12, %v4476_v46 }
 0x17f   : > { %v2582_v0 = vadd.f32 %v2581_v26, %v2533_v30 }
 0x181   : > { %v2488_v16 = vpop.f32.mrf.mxu2  ;;  %v2621_v21 = vadd.f32 %v2582_v0, %v1977_v54  ;;  %v1996_v0 = vpop.f32.mrf.mxu1 }
 0x183   : > { %v2588_v5 = vpop.f32.mrf.mxu0  ;;  %v2637_v40 = vmax.f32 %v2621_v21, 0.0 }
 0x184   : > { %v2534_v6 = vpop.f32.mrf.mxu3 }
 0x185   : > { %v2535_v17 = vadd.f32 %v2534_v6, %v2485_v33 }
 0x187   : > { %v2584_v20 = vadd.f32 %v2583_v32, %v2535_v17 }
 0x189   : > { %v2622_v53 = vadd.f32 %v2584_v20, %v1979_v23  ;;  %v2490_v59 = vpop.f32.mrf.mxu2  ;;  %v1998_v20 = vpop.f32.mrf.mxu1 }
 0x18b   : > { %v2638_v24 = vmax.f32 %v2622_v53, 0.0  ;;  %v2591_v19 = vpop.f32.mrf.mxu0 }
 0x18c   : > { %v2537_v25 = vpop.f32.mrf.mxu3 }
 0x18d   : > { %v2653_v37 = vpack.c.bf16 %v2638_v24, %v2637_v40  ;;  %v2538_v63 = vadd.f32 %v2537_v25, %v2488_v16 }
 0x18f   : > { %2733 = vmatmul.bf16.vlgmr.msra.gmra.mxu1 %v2653_v37  ;;  %v2587_v28 = vadd.f32 %v2586_v22, %v2538_v63 }
 0x191   : > { %v2493_v3 = vpop.f32.mrf.mxu2  ;;  %v2623_v41 = vadd.f32 %v2587_v28, %v1982_v58  ;;  %v2001_v28 = vpop.f32.mrf.mxu1 }
 0x193   : > { %v2593_v31 = vpop.f32.mrf.mxu0  ;;  %v2639_v49 = vmax.f32 %v2623_v41, 0.0 }
 0x194   : > { %v2539_v18 = vpop.f32.mrf.mxu3 }
 0x195   : > { %v2540_v51 = vadd.f32 %v2539_v18, %v2490_v59 }
 0x197   : > { %v2589_v1 = vadd.f32 %v2588_v5, %v2540_v51  ;;  %v1997_v51 = vadd.f32 %v1996_v0, %v4488_v44 }
 0x199   : > { %v2624_v42 = vadd.f32 %v2589_v1, %v1984_v4  ;;  %v2495_v47 = vpop.f32.mrf.mxu2  ;;  %v1999_v4 = vadd.f32 %v1998_v20, %v4493_v43  ;;  %v2003_v10 = vpop.f32.mrf.mxu1 }
 0x19a   : > { %v2004_v43 = vadd.f32 %v2003_v10, %v4504_v48  ;;  %v3635_v10 = vld [vmem:[%s3842_s28 + $0x10] sm:$0xff] }
 0x19b   : > { %v2640_v52 = vmax.f32 %v2624_v42, 0.0  ;;  %v2596_v56 = vpop.f32.mrf.mxu0 }
 0x19c   : > { %v2542_v8 = vpop.f32.mrf.mxu3 }
 0x19d   : > { %v2654_v39 = vpack.c.bf16 %v2640_v52, %v2639_v49  ;;  %v2543_v55 = vadd.f32 %v2542_v8, %v2493_v3 }
 0x19f   : > { %2738 = vmatmul.bf16.gmra.mxu1 %v2654_v39  ;;  %v2592_v9 = vadd.f32 %v2591_v19, %v2543_v55 }
 0x1a1   : > { %v2498_v26 = vpop.f32.mrf.mxu2  ;;  %v2625_v27 = vadd.f32 %v2592_v9, %v1987_v62  ;;  %v2002_v9 = vadd.f32 %v2001_v28, %v4499_v60  ;;  %v2006_v44 = vpop.f32.mrf.mxu1 }
 0x1a3   : > { %v2598_v32 = vpop.f32.mrf.mxu0  ;;  %v2641_v33 = vmax.f32 %v2625_v27, 0.0 }
 0x1a4   : > { %v2544_v2 = vpop.f32.mrf.mxu3 }
 0x1a5   : > { %v2545_v35 = vadd.f32 %v2544_v2, %v2495_v47 }
 0x1a7   : > { %v2594_v15 = vadd.f32 %v2593_v31, %v2545_v35 }
 0x1a9   : > { %v2626_v11 = vadd.f32 %v2594_v15, %v1989_v45  ;;  %v2500_v30 = vpop.f32.mrf.mxu2 }
 0x1ab   : > { %v2642_v57 = vmax.f32 %v2626_v11, 0.0  ;;  %v2601_v54 = vpop.f32.mrf.mxu0 }
 0x1ac   : > { %v2547_v22 = vpop.f32.mrf.mxu3 }
 0x1ad   : > { %v2655_v16 = vpack.c.bf16 %v2642_v57, %v2641_v33  ;;  %v2548_v6 = vadd.f32 %v2547_v22, %v2498_v26  ;;  %v2008_v57 = vpop.f32.mrf.mxu1 }
 0x1ae   : > { %v2009_v48 = vadd.f32 %v2008_v57, %v4515_v50 }
 0x1af   : > { %2743 = vmatmul.bf16.gmra.mxu1 %v2655_v16  ;;  %v2597_v17 = vadd.f32 %v2596_v56, %v2548_v6  ;;  %v2007_v6 = vadd.f32 %v2006_v44, %v4507_v34 }
 0x1b1   : > { %v2503_v23 = vpop.f32.mrf.mxu2  ;;  %v2627_v5 = vadd.f32 %v2597_v17, %v1992_v13 }
 0x1b3   : > { %v2603_v24 = vpop.f32.mrf.mxu0  ;;  %v2643_v59 = vmax.f32 %v2627_v5, 0.0 }
 0x1b4   : > { %v2549_v21 = vpop.f32.mrf.mxu3 }
 0x1b5   : > { %v2550_v14 = vadd.f32 %v2549_v21, %v2500_v30  ;;  %v2011_v21 = vpop.f32.mrf.mxu1 }
 0x1b6   : > { %v2012_v50 = vadd.f32 %v2011_v21, %v4518_v38 }
 0x1b7   : > { %v2599_v53 = vadd.f32 %v2598_v32, %v2550_v14 }
 0x1b9   : > { %v2628_v40 = vadd.f32 %v2599_v53, %v1994_v36  ;;  %v2505_v37 = vpop.f32.mrf.mxu2 }
 0x1bb   : > { %v2644_v25 = vmax.f32 %v2628_v40, 0.0  ;;  %v2606_v29 = vpop.f32.mrf.mxu0 }
 0x1bc   : > { %v2552_v61 = vpop.f32.mrf.mxu3 }
 0x1bd   : > { %v2656_v63 = vpack.c.bf16 %v2644_v25, %v2643_v59  ;;  %v2553_v19 = vadd.f32 %v2552_v61, %v2503_v23  ;;  %v2013_v59 = vpop.f32.mrf.mxu1 }
 0x1bf   : > { %2748 = vmatmul.bf16.gmra.mxu1 %v2656_v63  ;;  %v2602_v3 = vadd.f32 %v2601_v54, %v2553_v19  ;;  %v2014_v19 = vadd.f32 %v2013_v59, %v4520_v7  ;;  %v3633_v7 = vld [vmem:[%s3842_s28] sm:$0xff] }
 0x1c1   : > { %v2508_v18 = vpop.f32.mrf.mxu2  ;;  %v2629_v41 = vadd.f32 %v2602_v3, %v1997_v51 }
 0x1c3   : > { %v2645_v42 = vmax.f32 %v2629_v41, 0.0  ;;  %v2608_v39 = vpop.f32.mrf.mxu0  ;;  %v3634_v41 = vld [vmem:[%s3842_s28 + $0x8] sm:$0xff] }
 0x1c4   : > { %v2554_v58 = vpop.f32.mrf.mxu3 }
 0x1c5   : > { %v2555_v46 = vadd.f32 %v2554_v58, %v2505_v37 }
 0x1c7   : > { %v2604_v1 = vadd.f32 %v2603_v24, %v2555_v46 }
 0x1c9   : > { %v2630_v31 = vadd.f32 %v2604_v1, %v1999_v4  ;;  %v2510_v47 = vpop.f32.mrf.mxu2 }
 0x1cb   : > { %v2646_v49 = vmax.f32 %v2630_v31, 0.0  ;;  %v2611_v45 = vpop.f32.mrf.mxu0 }
 0x1cc   : > { %v2557_v52 = vpop.f32.mrf.mxu3 }
 0x1cd   : > { %v2657_v8 = vpack.c.bf16 %v2646_v49, %v2645_v42  ;;  %v2558_v55 = vadd.f32 %v2557_v52, %v2508_v18  ;;  %v3636_v52 = vld [vmem:[%s3842_s28 + $0x18] sm:$0xff] }
 0x1cf   : > { %2753 = vmatmul.bf16.gmra.mxu1 %v2657_v8  ;;  %v2607_v56 = vadd.f32 %v2606_v29, %v2558_v55 }
 0x1d1   : > { %v2513_v2 = vpop.f32.mrf.mxu2  ;;  %v2631_v62 = vadd.f32 %v2607_v56, %v2002_v9 }
 0x1d3   : > { %v2647_v15 = vmax.f32 %v2631_v62, 0.0  ;;  %v2613_v0 = vpop.f32.mrf.mxu0  ;;  %v3640_v62 = vld [vmem:[%s3842_s28 + $0x38] sm:$0xff] }
 0x1d4   : > { %v2559_v12 = vpop.f32.mrf.mxu3 }
 0x1d5   : > { %v2560_v26 = vadd.f32 %v2559_v12, %v2510_v47  ;;  %v3638_v12 = vld [vmem:[%s3842_s28 + $0x28] sm:$0xff] }
 0x1d7   : > { %v2609_v35 = vadd.f32 %v2608_v39, %v2560_v26  ;;  %v3637_v39 = vld [vmem:[%s3842_s28 + $0x20] sm:$0xff]  ;;  %v3639_v26 = vld [vmem:[%s3842_s28 + $0x30] sm:$0xff] }
 0x1d9   : > { %v2632_v27 = vadd.f32 %v2609_v35, %v2004_v43  ;;  %v2515_v22 = vpop.f32.mrf.mxu2 }
 0x1db   : > { %v2648_v32 = vmax.f32 %v2632_v27, 0.0  ;;  %v2616_v5 = vpop.f32.mrf.mxu0  ;;  %v3641_v27 = vld [vmem:[%s3842_s28 + $0x40] sm:$0xff] }
 0x1dc   : > { %v2562_v11 = vpop.f32.mrf.mxu3 }
 0x1dd   : > { %v2658_v33 = vpack.c.bf16 %v2648_v32, %v2647_v15  ;;  %v2563_v30 = vadd.f32 %v2562_v11, %v2513_v2  ;;  %v3642_v11 = vld [vmem:[%s3842_s28 + $0x48] sm:$0xff] }
 0x1df   : > { %2758 = vmatmul.bf16.gmra.mxu1 %v2658_v33  ;;  %v2612_v16 = vadd.f32 %v2611_v45, %v2563_v30  ;;  %v3643_v30 = vld [vmem:[%s3842_s28 + $0x50] sm:$0xff] }
 0x1e1   : > { %v2633_v17 = vadd.f32 %v2612_v16, %v2007_v6  ;;  %v2518_v14 = vpop.f32.mrf.mxu2  ;;  %v3644_v16 = vld [vmem:[%s3842_s28 + $0x58] sm:$0xff] }
 0x1e3   : > { %v2649_v36 = vmax.f32 %v2633_v17, 0.0  ;;  %v2618_v63 = vpop.f32.mrf.mxu0 }
 0x1e4   : > { %v2564_v60 = vpop.f32.mrf.mxu3 }
 0x1e5   : > { %v2565_v54 = vadd.f32 %v2564_v60, %v2515_v22 }
 0x1e7   : > { %v2614_v23 = vadd.f32 %v2613_v0, %v2565_v54  ;;  %v3645_v54 = vld [vmem:[%s3842_s28 + $0x60] sm:$0xff] }
 0x1e9   : > { %v2634_v13 = vadd.f32 %v2614_v23, %v2009_v48  ;;  %v2520_v34 = vpop.f32.mrf.mxu2  ;;  %v3646_v23 = vld [vmem:[%s3842_s28 + $0x68] sm:$0xff] }
 0x1eb   : > { %v2650_v20 = vmax.f32 %v2634_v13, 0.0 }
 0x1ec   : > { %v2567_v53 = vpop.f32.mrf.mxu3 }
 0x1ed   : > { %v2659_v40 = vpack.c.bf16 %v2650_v20, %v2649_v36  ;;  %v2568_v24 = vadd.f32 %v2567_v53, %v2518_v14  ;;  %v3647_v14 = vld [vmem:[%s3842_s28 + $0x70] sm:$0xff] }
 0x1ef   : > { %2763 = vmatmul.bf16.gmra.mxu1 %v2659_v40  ;;  %v2617_v25 = vadd.f32 %v2616_v5, %v2568_v24  ;;  %v3648_v5 = vld [vmem:[%s3842_s28 + $0x78] sm:$0xff] }
 0x1f1   : > { %v2635_v28 = vadd.f32 %v2617_v25, %v2012_v50 }
 0x1f3   : > { %v2651_v58 = vmax.f32 %v2635_v28, 0.0 }
 0x1f4   : > { %v2569_v37 = vpop.f32.mrf.mxu3 }
 0x1f5   : > { %v2570_v61 = vadd.f32 %v2569_v37, %v2520_v34 }
 0x1f7   : > { %v2619_v3 = vadd.f32 %v2618_v63, %v2570_v61 }
 0x1f9   : > { %v2636_v18 = vadd.f32 %v2619_v3, %v2014_v19 }
 0x1fb   : > { %v2652_v29 = vmax.f32 %v2636_v18, 0.0 }
 0x1fd   : > { %v2660_v51 = vpack.c.bf16 %v2652_v29, %v2651_v58 }
 0x1ff   : > { %2768 = vmatmul.bf16.gmra.mxu1 %v2660_v51 }
 0x20c   : > { %v2734_v38 = vpop.f32.mrf.mxu1 }
 0x20d   : > { %v2774_v46 = vadd.f32 %v3633_v7, %v2734_v38 }
 0x20f   : > { %2790 = vst [vmem:[%s4543_s9] sm:$0xff] %v2774_v46 }
 0x214   : > { %v2736_v4 = vpop.f32.mrf.mxu1 }
 0x215   : > { %v2775_v1 = vadd.f32 %v3634_v41, %v2736_v4 }
 0x217   : > { %2791 = vst [vmem:[%s4543_s9 + $0x8] sm:$0xff] %v2775_v1 }
 0x21c   : > { %v2739_v31 = vpop.f32.mrf.mxu1 }
 0x21d   : > { %v2776_v42 = vadd.f32 %v3635_v10, %v2739_v31 }
 0x21f   : > { %2792 = vst [vmem:[%s4543_s9 + $0x10] sm:$0xff] %v2776_v42 }
 0x224   : > { %v2741_v49 = vpop.f32.mrf.mxu1 }
 0x225   : > { %v2777_v47 = vadd.f32 %v3636_v52, %v2741_v49 }
 0x227   : > { %2793 = vst [vmem:[%s4543_s9 + $0x18] sm:$0xff] %v2777_v47 }
 0x22c   : > { %v2744_v8 = vpop.f32.mrf.mxu1 }
 0x22d   : > { %v2778_v55 = vadd.f32 %v3637_v39, %v2744_v8 }
 0x22f   : > { %2794 = vst [vmem:[%s4543_s9 + $0x20] sm:$0xff] %v2778_v55 }
 0x234   : > { %v2746_v56 = vpop.f32.mrf.mxu1 }
 0x235   : > { %v2779_v9 = vadd.f32 %v3638_v12, %v2746_v56 }
 0x237   : > { %2795 = vst [vmem:[%s4543_s9 + $0x28] sm:$0xff] %v2779_v9 }
 0x23c   : > { %v2749_v44 = vpop.f32.mrf.mxu1 }
 0x23d   : > { %v2780_v2 = vadd.f32 %v3639_v26, %v2749_v44 }
 0x23f   : > { %2796 = vst [vmem:[%s4543_s9 + $0x30] sm:$0xff] %v2780_v2 }
 0x244   : > { %v2751_v43 = vpop.f32.mrf.mxu1 }
 0x245   : > { %v2781_v35 = vadd.f32 %v3640_v62, %v2751_v43 }
 0x247   : > { %2797 = vst [vmem:[%s4543_s9 + $0x38] sm:$0xff] %v2781_v35 }
 0x24c   : > { %v2754_v45 = vpop.f32.mrf.mxu1 }
 0x24d   : > { %v2782_v15 = vadd.f32 %v3641_v27, %v2754_v45 }
 0x24f   : > { %2798 = vst [vmem:[%s4543_s9 + $0x40] sm:$0xff] %v2782_v15 }
 0x254   : > { %v2756_v32 = vpop.f32.mrf.mxu1 }
 0x255   : > { %v2783_v33 = vadd.f32 %v3642_v11, %v2756_v32 }
 0x257   : > { %2799 = vst [vmem:[%s4543_s9 + $0x48] sm:$0xff] %v2783_v33 }
 0x25c   : > { %v2759_v57 = vpop.f32.mrf.mxu1 }
 0x25d   : > { %v2784_v22 = vadd.f32 %v3643_v30, %v2759_v57 }
 0x25f   : > { %2800 = vst [vmem:[%s4543_s9 + $0x50] sm:$0xff] %v2784_v22 }
 0x264   : > { %v2761_v0 = vpop.f32.mrf.mxu1 }
 0x265   : > { %v2785_v60 = vadd.f32 %v3644_v16, %v2761_v0 }
 0x267   : > { %2801 = vst [vmem:[%s4543_s9 + $0x58] sm:$0xff] %v2785_v60 }
 0x26c   : > { %v2764_v6 = vpop.f32.mrf.mxu1 }
 0x26d   : > { %v2786_v48 = vadd.f32 %v3645_v54, %v2764_v6 }
 0x26f   : > { %2802 = vst [vmem:[%s4543_s9 + $0x60] sm:$0xff] %v2786_v48 }
 0x274   : > { %v2766_v17 = vpop.f32.mrf.mxu1 }
 0x275   : > { %v2787_v21 = vadd.f32 %v3646_v23, %v2766_v17 }
 0x277   : > { %2803 = vst [vmem:[%s4543_s9 + $0x68] sm:$0xff] %v2787_v21 }
 0x27c   : > { %v2769_v13 = vpop.f32.mrf.mxu1 }
 0x27d   : > { %v2788_v36 = vadd.f32 %v3647_v14, %v2769_v13 }
 0x27f   : > { %2804 = vst [vmem:[%s4543_s9 + $0x70] sm:$0xff] %v2788_v36 }
 0x284   : > { %v2771_v20 = vpop.f32.mrf.mxu1 }
 0x285   : > { %v2789_v53 = vadd.f32 %v3648_v5, %v2771_v20 }
 0x287   : > { %2805 = vst [vmem:[%s4543_s9 + $0x78] sm:$0xff] %v2789_v53 }
 0x288 PF: > { %s15_s22 = sadd.s32 1, %s3723_s22   ;;  %s4607_s18 = smov %s3715_s20 }
 0x289   : > { %p12_p12 = scmp.ge.s32.totalorder %s15_s22, 6   ;;  %s4608_s19 = smov %s3719_s21 }
 0x28a   : > { %s4609_s20 = smov %s4612_s23  ;;  %s4610_s21 = smov %s4616_s24 }
 0x28b   :  { %14 = sbr.rel (!%p12_p12) target bundleno = 3 (0x3), region = 81 }

</bundles_post_ra>
